<compile_context>
chip_gen: v7x
topology: tpu7x:2x2x1
jax: 0.10.0
libtpu: 0.0.40
codegen_flags: <defaults>
</compile_context>

<pallas_src>
import jax
import jax.numpy as jnp
from jax import lax
from jax.experimental import pallas as pl
from jax.experimental.pallas import tpu as pltpu

POOL_K = 31
POOL_PAD = 15
_LANES = 128


def _structure_loss_kernel(pred_ref, mask_ref, ah_ref, aw_ref,
                           bce_ref, inter_ref, union_ref):
    pred = pred_ref[...].astype(jnp.float32)      # (tb, H, W)
    mask_src = mask_ref[...]
    mask = mask_src.astype(jnp.float32)           # (tb, H, W)
    tb, h, w = pred.shape

    # ---- avg_pool2d(mask, 31, stride=1, padding=15, count_include_pad=True)
    # == (A_h @ mask @ A_w) / 961  with zero padding (separable box filter).
    # bf16 operands, f32 accumulation: exact for binary masks (ints <= 961).
    mask_bf = mask_src.astype(jnp.bfloat16)
    aw = aw_ref[...]                              # (W, W) bf16 band matrix
    ah = ah_ref[...]                              # (H, H) bf16 band matrix

    # W-pool as one MXU-filling 2-D matmul: (tb*H, W) @ (W, W).
    y = jnp.dot(mask_bf.reshape(tb * h, w), aw,
                preferred_element_type=jnp.float32)
    # Intermediate is an integer in [0, 31] for binary masks -> bf16 exact.
    # TODO(synk): keep this intermediate in f32 if soft (non-binary) masks are used.
    y = y.reshape(tb, h, w).astype(jnp.bfloat16)
    # H-pool as a batched matmul; 2-D band matrix broadcast in VMEM (tiny).
    ah_b = jnp.broadcast_to(ah[None, :, :], (tb, h, h))
    pooled = jnp.einsum('bij,bjw->biw', ah_b, y,
                        preferred_element_type=jnp.float32)
    pooled = pooled * (1.0 / float(POOL_K * POOL_K))

    weit = 1.0 + 5.0 * jnp.abs(pooled - mask)

    # ---- BCE-with-logits (stable form) sharing its exponential with sigmoid
    # (one EUP exp per element instead of two).
    e = jnp.exp(-jnp.abs(pred))
    bce = jnp.maximum(pred, 0.0) - pred * mask + jnp.log(1.0 + e)
    r = 1.0 / (1.0 + e)
    sig = jnp.where(pred >= 0.0, r, e * r)        # == sigmoid(pred)

    sw = sig * weit
    mw = mask * weit

    def _rsum(x):                                 # (tb, H, W) -> (tb, 1)
        s = jnp.sum(x, axis=1)                    # sublane axis first (cheap)
        return jnp.sum(s, axis=1, keepdims=True)  # then a small lane reduce

    bce_sum = _rsum(bce)
    inter = _rsum(sw * mask)
    union = _rsum(sw) + _rsum(mw)

    # Lane-dense full-tile stores (outputs are tiny; host reads column 0).
    bce_ref[...] = jnp.broadcast_to(bce_sum, (tb, _LANES))
    inter_ref[...] = jnp.broadcast_to(inter, (tb, _LANES))
    union_ref[...] = jnp.broadcast_to(union, (tb, _LANES))


def _band_matrix(n, dtype=jnp.bfloat16):
    idx = jnp.arange(n)
    return (jnp.abs(idx[:, None] - idx[None, :]) <= POOL_PAD).astype(dtype)


def _pick_bc_tile(bc, h, w, in_itemsize):
    """Largest multiple-of-8 BC tile whose working set fits a VMEM budget."""
    try:
        vmem_cap = int(pltpu.get_tpu_info().vmem_capacity_bytes)
    except Exception:
        vmem_cap = 64 * 1024 * 1024          # conservative (v7x physical VMEM)
    budget = vmem_cap // 3                   # room for double-buffered inputs etc.
    # Rough live bytes per batch-channel slice inside the kernel:
    # ~10 f32 temps + 2 inputs x 2 pipeline buffers + broadcast band matrix.
    per_bc = h * w * (10 * 4 + 2 * 2 * in_itemsize) + 2 * h * h
    tb = max(8, (budget // max(per_bc, 1)) // 8 * 8)
    tb = min(tb, ((bc + 7) // 8) * 8)
    return int(tb), vmem_cap


def structure_loss(pred, mask, *, tile_bc=None):
    """pred, mask: (N, C, H, W) arrays. Returns the scalar structure loss (f32)."""
    n, c, h, w = pred.shape
    bc = n * c
    # Keep source dtype for the HBM->VMEM DMA; upcast inside the kernel.
    pred_r = pred.reshape(bc, h, w)
    mask_r = mask.reshape(bc, h, w)

    in_itemsize = max(jnp.dtype(pred.dtype).itemsize, jnp.dtype(mask.dtype).itemsize)
    tb_auto, vmem_cap = _pick_bc_tile(bc, h, w, in_itemsize)
    tb = int(tile_bc) if tile_bc is not None else tb_auto
    assert tb % 8 == 0, "BC tile must be a multiple of 8"

    bcp = ((bc + tb - 1) // tb) * tb
    if bcp != bc:
        # Pad batch-channels with zeros; padded rows are dropped in the combine.
        pad = ((0, bcp - bc), (0, 0), (0, 0))
        pred_r = jnp.pad(pred_r, pad)
        mask_r = jnp.pad(mask_r, pad)

    ah = _band_matrix(h)        # (H, H), |i-j| <= 15, bf16 (exact 0/1)
    aw = _band_matrix(w)        # (W, W)

    grid = (bcp // tb,)
    flops = 2 * bcp * h * w * (h + w) + 25 * bcp * h * w
    bytes_accessed = (pred_r.size * pred_r.dtype.itemsize
                      + mask_r.size * mask_r.dtype.itemsize
                      + (h * h + w * w) * 2 + 3 * bcp * _LANES * 4)

    out_shape = tuple(jax.ShapeDtypeStruct((bcp, _LANES), jnp.float32)
                      for _ in range(3))
    out_spec = pl.BlockSpec((tb, _LANES), lambda i: (i, 0))

    bce_p, inter_p, union_p = pl.pallas_call(
        _structure_loss_kernel,
        out_shape=out_shape,
        grid=grid,
        in_specs=[
            pl.BlockSpec((tb, h, w), lambda i: (i, 0, 0)),   # pred tile
            pl.BlockSpec((tb, h, w), lambda i: (i, 0, 0)),   # mask tile
            pl.BlockSpec((h, h), lambda i: (0, 0)),          # H band matrix (shared)
            pl.BlockSpec((w, w), lambda i: (0, 0)),          # W band matrix (shared)
        ],
        out_specs=(out_spec, out_spec, out_spec),
        compiler_params=pltpu.CompilerParams(
            dimension_semantics=("parallel",),
            vmem_limit_bytes=int(vmem_cap * 0.85),
        ),
        cost_estimate=pl.CostEstimate(
            flops=int(flops),
            transcendentals=int(2 * bcp * h * w),
            bytes_accessed=int(bytes_accessed),
        ),
    )(pred_r, mask_r, ah, aw)

    # Few-flop scalar combine in plain JAX (drop padded rows first).
    bce_total = jnp.sum(bce_p[:bc, 0])
    inter = inter_p[:bc, 0]
    union = union_p[:bc, 0]
    mean_bce = bce_total / float(bc * h * w)   # == wbce for every (n, c) channel
    wiou = 1.0 - inter / (union - inter)
    return mean_bce + jnp.mean(wiou)


def _reference(pred, mask):
    """Pure-JAX reference reproducing the literal PyTorch semantics."""
    pooled = lax.reduce_window(
        mask, 0.0, lax.add, (1, 1, POOL_K, POOL_K), (1, 1, 1, 1),
        [(0, 0), (0, 0), (POOL_PAD, POOL_PAD), (POOL_PAD, POOL_PAD)],
    ) / float(POOL_K * POOL_K)
    weit = 1.0 + 5.0 * jnp.abs(pooled - mask)
    bce = (jnp.maximum(pred, 0.0) - pred * mask
           + jnp.log1p(jnp.exp(-jnp.abs(pred))))
    mean_bce = jnp.mean(bce)   # reduce='none' (legacy, truthy) -> reduction='mean'
    wbce = (weit * mean_bce).sum(axis=(2, 3)) / weit.sum(axis=(2, 3))
    sig = jax.nn.sigmoid(pred)
    inter = (sig * mask * weit).sum(axis=(2, 3))
    union = ((sig + mask) * weit).sum(axis=(2, 3))
    wiou = 1.0 - inter / (union - inter)
    return jnp.mean(wbce + wiou)


if __name__ == "__main__":
    key = jax.random.PRNGKey(0)
    k1, k2 = jax.random.split(key)

    # Small config (single-tile grid).
    pred = jax.random.normal(k1, (2, 4, 16, 16), dtype=jnp.float32)
    mask = (jax.random.uniform(k2, (2, 4, 16, 16)) > 0.5).astype(jnp.float32)
    loss = structure_loss(pred, mask)
    jax.block_until_ready(loss)
    ref = _reference(pred, mask)
    assert jnp.allclose(loss, ref, rtol=1e-4, atol=1e-4), (float(loss), float(ref))

    # Slightly larger config forcing a multi-tile (pipelined, parallel) grid.
    k3, k4 = jax.random.split(k2)
    pred2 = jax.random.normal(k3, (2, 8, 32, 32), dtype=jnp.float32)
    mask2 = (jax.random.uniform(k4, (2, 8, 32, 32)) > 0.5).astype(jnp.float32)
    loss2 = structure_loss(pred2, mask2, tile_bc=8)   # BC=16 -> grid of 2 tiles
    jax.block_until_ready(loss2)
    ref2 = _reference(pred2, mask2)
    assert jnp.allclose(loss2, ref2, rtol=1e-4, atol=1e-4), (float(loss2), float(ref2))

    print("KERNEL_OK")
</pallas_src>

<mosaic_0001>
module attributes {stable_mosaic.version = 11 : i64} {
  func.func @_structure_loss_kernel(%arg0: i32, %arg1: memref<8x16x16xf32, #tpu.memory_space<vmem>>, %arg2: memref<8x16x16xf32, #tpu.memory_space<vmem>>, %arg3: memref<16x16xbf16, #tpu.memory_space<vmem>>, %arg4: memref<16x16xbf16, #tpu.memory_space<vmem>>, %arg5: memref<8x128xf32, #tpu.memory_space<vmem>>, %arg6: memref<8x128xf32, #tpu.memory_space<vmem>>, %arg7: memref<8x128xf32, #tpu.memory_space<vmem>>) attributes {dimension_semantics = [#tpu.dimension_semantics<parallel>], iteration_bounds = array<i64: 1>, scalar_prefetch = 0 : i64, scratch_operands = 0 : i64, tpu.core_type = #tpu.core_type<tc>, window_params = [{transform_indices = @transform_0, window_bounds = array<i64: 8, 16, 16>}, {transform_indices = @transform_1, window_bounds = array<i64: 8, 16, 16>}, {pipeline_mode = #tpu.pipeline_mode<synchronous>, transform_indices = @transform_2, window_bounds = array<i64: 16, 16>}, {pipeline_mode = #tpu.pipeline_mode<synchronous>, transform_indices = @transform_3, window_bounds = array<i64: 16, 16>}, {transform_indices = @transform_4, window_bounds = array<i64: 8, 128>}, {transform_indices = @transform_5, window_bounds = array<i64: 8, 128>}, {transform_indices = @transform_6, window_bounds = array<i64: 8, 128>}]} {
    %c0 = arith.constant 0 : index
    %c0_0 = arith.constant 0 : index
    %c0_1 = arith.constant 0 : index
    %0 = vector.load %arg1[%c0, %c0_0, %c0_1] : memref<8x16x16xf32, #tpu.memory_space<vmem>>, vector<8x16x16xf32>
    %c0_2 = arith.constant 0 : index
    %c0_3 = arith.constant 0 : index
    %c0_4 = arith.constant 0 : index
    %1 = vector.load %arg2[%c0_2, %c0_3, %c0_4] : memref<8x16x16xf32, #tpu.memory_space<vmem>>, vector<8x16x16xf32>
    %2 = arith.truncf %1 : vector<8x16x16xf32> to vector<8x16x16xbf16>
    %c0_5 = arith.constant 0 : index
    %c0_6 = arith.constant 0 : index
    %3 = vector.load %arg4[%c0_5, %c0_6] : memref<16x16xbf16, #tpu.memory_space<vmem>>, vector<16x16xbf16>
    %c0_7 = arith.constant 0 : index
    %c0_8 = arith.constant 0 : index
    %4 = vector.load %arg3[%c0_7, %c0_8] : memref<16x16xbf16, #tpu.memory_space<vmem>>, vector<16x16xbf16>
    %5 = vector.shape_cast %2 : vector<8x16x16xbf16> to vector<128x16xbf16>
    %cst = arith.constant dense<0.000000e+00> : vector<128x16xf32>
    %6 = tpu.matmul %5, %3, %cst {dimension_numbers = #tpu.dot_dimension_numbers<[1], [0], [0], [1], [0, 0, 1, 1], [], []>} : vector<128x16xbf16>, vector<16x16xbf16>, vector<128x16xf32> -> vector<128x16xf32>
    %7 = vector.shape_cast %6 : vector<128x16xf32> to vector<8x16x16xf32>
    %8 = arith.truncf %7 : vector<8x16x16xf32> to vector<8x16x16xbf16>
    %9 = vector.shape_cast %4 : vector<16x16xbf16> to vector<1x16x16xbf16>
    %10 = vector.shape_cast %9 : vector<1x16x16xbf16> to vector<1x16x16xbf16>
    %11 = vector.broadcast %10 : vector<1x16x16xbf16> to vector<8x16x16xbf16>
    "tpu.trace_start"() <{level = 10 : i32, message = "bij,bjw->biw"}> : () -> ()
    %cst_9 = arith.constant dense<0.000000e+00> : vector<8x16x16xf32>
    %12 = tpu.matmul %11, %8, %cst_9 {dimension_numbers = #tpu.dot_dimension_numbers<[2], [1], [1], [2], [0, 0, 0, 1, 1, 2], [0], [0]>} : vector<8x16x16xbf16>, vector<8x16x16xbf16>, vector<8x16x16xf32> -> vector<8x16x16xf32>
    "tpu.trace_stop"() : () -> ()
    %cst_10 = arith.constant 0.00104058278 : f32
    %13 = vector.broadcast %cst_10 : f32 to vector<8x16x16xf32>
    %14 = arith.mulf %12, %13 : vector<8x16x16xf32>
    %15 = arith.subf %14, %1 : vector<8x16x16xf32>
    %16 = math.absf %15 : vector<8x16x16xf32>
    %cst_11 = arith.constant 5.000000e+00 : f32
    %17 = vector.broadcast %cst_11 : f32 to vector<8x16x16xf32>
    %18 = arith.mulf %17, %16 : vector<8x16x16xf32>
    %cst_12 = arith.constant 1.000000e+00 : f32
    %19 = vector.broadcast %cst_12 : f32 to vector<8x16x16xf32>
    %20 = arith.addf %19, %18 : vector<8x16x16xf32>
    %21 = math.absf %0 : vector<8x16x16xf32>
    %cst_13 = arith.constant 0.000000e+00 : f32
    %22 = vector.broadcast %cst_13 : f32 to vector<8x16x16xf32>
    %23 = arith.subf %22, %21 : vector<8x16x16xf32>
    %24 = math.exp %23 : vector<8x16x16xf32>
    %cst_14 = arith.constant 0.000000e+00 : f32
    %25 = vector.broadcast %cst_14 : f32 to vector<8x16x16xf32>
    %26 = arith.maximumf %0, %25 : vector<8x16x16xf32>
    %27 = arith.mulf %0, %1 : vector<8x16x16xf32>
    %28 = arith.subf %26, %27 : vector<8x16x16xf32>
    %cst_15 = arith.constant 1.000000e+00 : f32
    %29 = vector.broadcast %cst_15 : f32 to vector<8x16x16xf32>
    %30 = arith.addf %29, %24 : vector<8x16x16xf32>
    %31 = math.log %30 : vector<8x16x16xf32>
    %32 = arith.addf %28, %31 : vector<8x16x16xf32>
    %cst_16 = arith.constant 1.000000e+00 : f32
    %33 = vector.broadcast %cst_16 : f32 to vector<8x16x16xf32>
    %34 = arith.addf %33, %24 : vector<8x16x16xf32>
    %cst_17 = arith.constant 1.000000e+00 : f32
    %35 = vector.broadcast %cst_17 : f32 to vector<8x16x16xf32>
    %36 = arith.divf %35, %34 : vector<8x16x16xf32>
    %cst_18 = arith.constant 0.000000e+00 : f32
    %37 = vector.broadcast %cst_18 : f32 to vector<8x16x16xf32>
    %38 = arith.cmpf oge, %0, %37 : vector<8x16x16xf32>
    %39 = arith.mulf %24, %36 : vector<8x16x16xf32>
    %40 = arith.select %38, %36, %39 : vector<8x16x16xi1>, vector<8x16x16xf32>
    %41 = arith.mulf %40, %20 : vector<8x16x16xf32>
    %42 = arith.mulf %1, %20 : vector<8x16x16xf32>
    %cst_19 = arith.constant dense<0.000000e+00> : vector<8x16xf32>
    %43 = vector.multi_reduction <add>, %32, %cst_19 [1] : vector<8x16x16xf32> to vector<8x16xf32>
    %cst_20 = arith.constant dense<0.000000e+00> : vector<8xf32>
    %44 = vector.multi_reduction <add>, %43, %cst_20 [1] : vector<8x16xf32> to vector<8xf32>
    %45 = vector.shape_cast %44 : vector<8xf32> to vector<8x1xf32>
    %46 = arith.mulf %41, %1 : vector<8x16x16xf32>
    %cst_21 = arith.constant dense<0.000000e+00> : vector<8x16xf32>
    %47 = vector.multi_reduction <add>, %46, %cst_21 [1] : vector<8x16x16xf32> to vector<8x16xf32>
    %cst_22 = arith.constant dense<0.000000e+00> : vector<8xf32>
    %48 = vector.multi_reduction <add>, %47, %cst_22 [1] : vector<8x16xf32> to vector<8xf32>
    %49 = vector.shape_cast %48 : vector<8xf32> to vector<8x1xf32>
    %cst_23 = arith.constant dense<0.000000e+00> : vector<8x16xf32>
    %50 = vector.multi_reduction <add>, %41, %cst_23 [1] : vector<8x16x16xf32> to vector<8x16xf32>
    %cst_24 = arith.constant dense<0.000000e+00> : vector<8xf32>
    %51 = vector.multi_reduction <add>, %50, %cst_24 [1] : vector<8x16xf32> to vector<8xf32>
    %52 = vector.shape_cast %51 : vector<8xf32> to vector<8x1xf32>
    %cst_25 = arith.constant dense<0.000000e+00> : vector<8x16xf32>
    %53 = vector.multi_reduction <add>, %42, %cst_25 [1] : vector<8x16x16xf32> to vector<8x16xf32>
    %cst_26 = arith.constant dense<0.000000e+00> : vector<8xf32>
    %54 = vector.multi_reduction <add>, %53, %cst_26 [1] : vector<8x16xf32> to vector<8xf32>
    %55 = vector.shape_cast %54 : vector<8xf32> to vector<8x1xf32>
    %56 = arith.addf %52, %55 : vector<8x1xf32>
    %57 = vector.shape_cast %45 : vector<8x1xf32> to vector<8x1xf32>
    %58 = vector.broadcast %57 : vector<8x1xf32> to vector<8x128xf32>
    %c0_27 = arith.constant 0 : index
    %c0_28 = arith.constant 0 : index
    %59 = vector.load %arg5[%c0_27, %c0_28] : memref<8x128xf32, #tpu.memory_space<vmem>>, vector<8x128xf32>
    tpu.vector_store %arg5[%c0_27, %c0_28], %58 {strides = array<i32>} : memref<8x128xf32, #tpu.memory_space<vmem>>, vector<8x128xf32>,
    %60 = vector.shape_cast %49 : vector<8x1xf32> to vector<8x1xf32>
    %61 = vector.broadcast %60 : vector<8x1xf32> to vector<8x128xf32>
    %c0_29 = arith.constant 0 : index
    %c0_30 = arith.constant 0 : index
    %62 = vector.load %arg6[%c0_29, %c0_30] : memref<8x128xf32, #tpu.memory_space<vmem>>, vector<8x128xf32>
    tpu.vector_store %arg6[%c0_29, %c0_30], %61 {strides = array<i32>} : memref<8x128xf32, #tpu.memory_space<vmem>>, vector<8x128xf32>,
    %63 = vector.shape_cast %56 : vector<8x1xf32> to vector<8x1xf32>
    %64 = vector.broadcast %63 : vector<8x1xf32> to vector<8x128xf32>
    %c0_31 = arith.constant 0 : index
    %c0_32 = arith.constant 0 : index
    %65 = vector.load %arg7[%c0_31, %c0_32] : memref<8x128xf32, #tpu.memory_space<vmem>>, vector<8x128xf32>
    tpu.vector_store %arg7[%c0_31, %c0_32], %64 {strides = array<i32>} : memref<8x128xf32, #tpu.memory_space<vmem>>, vector<8x128xf32>,
    return
  }
  func.func @transform_0(%arg0: i32) -> (i32, i32, i32) {
    %c0_i32 = arith.constant 0 : i32
    %c0_i32_0 = arith.constant 0 : i32
    %c0_i32_1 = arith.constant 0 : i32
    return %arg0, %c0_i32, %c0_i32_0 : i32, i32, i32
  }
  func.func @transform_1(%arg0: i32) -> (i32, i32, i32) {
    %c0_i32 = arith.constant 0 : i32
    %c0_i32_0 = arith.constant 0 : i32
    %c0_i32_1 = arith.constant 0 : i32
    return %arg0, %c0_i32, %c0_i32_0 : i32, i32, i32
  }
  func.func @transform_2(%arg0: i32) -> (i32, i32) {
    %c0_i32 = arith.constant 0 : i32
    %c0_i32_0 = arith.constant 0 : i32
    %c0_i32_1 = arith.constant 0 : i32
    return %c0_i32, %c0_i32_0 : i32, i32
  }
  func.func @transform_3(%arg0: i32) -> (i32, i32) {
    %c0_i32 = arith.constant 0 : i32
    %c0_i32_0 = arith.constant 0 : i32
    %c0_i32_1 = arith.constant 0 : i32
    return %c0_i32, %c0_i32_0 : i32, i32
  }
  func.func @transform_4(%arg0: i32) -> (i32, i32) {
    %c0_i32 = arith.constant 0 : i32
    %c0_i32_0 = arith.constant 0 : i32
    return %arg0, %c0_i32 : i32, i32
  }
  func.func @transform_5(%arg0: i32) -> (i32, i32) {
    %c0_i32 = arith.constant 0 : i32
    %c0_i32_0 = arith.constant 0 : i32
    return %arg0, %c0_i32 : i32, i32
  }
  func.func @transform_6(%arg0: i32) -> (i32, i32) {
    %c0_i32 = arith.constant 0 : i32
    %c0_i32_0 = arith.constant 0 : i32
    return %arg0, %c0_i32 : i32, i32
  }
}

</mosaic_0001>

<bundles_post_ra>
// kernel: tpu_custom_call.1
= control target key start
LH: loop header
LB: loop body
LE: loop exit
PB: predicated region body
PF: predicated region fallthrough
CT: control target
= control target key end

     0   :  { %12 = vsyncpa [#allocation3], 0  ;;  %s2485_s0 = inlined_call_operand.hbm [shape: f32[8,16,16], index: 0, kind: input, shape index: {}]   ;;  %s2486_s1 = inlined_call_operand.hbm [shape: f32[8,16,16], index: 1, kind: input, shape index: {}]   ;;  %s2487_s2 = inlined_call_operand.hbm [shape: bf16[16,16], index: 2, kind: input, shape index: {}]   ;;  %s2488_s3 = inlined_call_operand.vmem [shape: bf16[16,16], index: 3, kind: input, shape index: {}]   ;;  %s2489_s4 = inlined_call_operand.hbm [shape: f32[8,128], index: 4, kind: output, shape index: {0}]   ;;  %s2490_s5 = inlined_call_operand.hbm [shape: f32[8,128], index: 5, kind: output, shape index: {1}]   ;;  %s2491_s6 = inlined_call_operand.hbm [shape: f32[8,128], index: 6, kind: output, shape index: {2}]  }
   0x1   :  { %13 = vsyncpa [#allocation6], 0 }
   0x2   :  { %14 = vsyncpa [#allocation4], 0 }
   0x3   :  { %15 = vsyncpa [#allocation10], 0  ;;  %s1755_s21 = smov [#allocation5]   ;;  %s1756_s23 = smov [#allocation2]  }
   0x4   :  { %s33_s22 = sshll.u32 %s1755_s21, 4  ;;  %s21_s24 = sshll.u32 %s1756_s23, 4  ;;  %s34_s22 = int_to_ptr.vmem [resolvable:$true] %s33_s22  ;;  %s1802_s24 = int_to_ptr.vmem [resolvable:$true] %s21_s24 }
   0x5   :  { %s1615_s27 = scalar_lea.hbm %s2486_s1, 2048 }
   0x6   :  { %p1616_p0 = scmp.ne.s32.totalorder %s2486_s1, %s1615_s27  ;;  %p1619_p1 = scmp.lt.u32.totalorder %s1615_s27, %s2486_s1 }
   0x8   :  { %p1621_p2 = pnand %p1619_p1, %p1616_p0 }
   0xa   :  { %1624 = shalt.err (!%p1621_p2)
}
   0xb   :  { %s1625_s8 = scalar_lea.vmem %s34_s22, 2048  ;;  %p1630_p4 = scmp.lt.s32.totalorder %s34_s22, %s34_s22 }
   0xc   :  { %p1626_p3 = scmp.ne.s32.totalorder %s34_s22, %s1625_s8  ;;  %p1631_p5 = scmp.lt.s32.totalorder %s1625_s8, %s1625_s8 }
   0xe   :  { %p1632_p6 = por %p1631_p5, %p1630_p4 }
  0x10   :  { %p1633_p7 = pnand %p1632_p6, %p1626_p3 }
  0x12   :  { %1636 = shalt.err (!%p1633_p7)
}
  0x13   :  { %s1757_s9 = smov 128   ;;  %s1758_s10 = smov 8  }
  0x14   :  { %39 = dma.hbm_to_vmem [thread:$0]  %s2486_s1, 2048, %s34_s22, [#allocation6], %s1757_s9, %s1757_s9, %s1758_s10  }
  0x15   :  { %s1637_s15 = scalar_lea.hbm %s2485_s0, 2048 }
  0x16   :  { %p1638_p8 = scmp.ne.s32.totalorder %s2485_s0, %s1637_s15  ;;  %p1641_p9 = scmp.lt.u32.totalorder %s1637_s15, %s2485_s0 }
  0x18   :  { %p1643_p10 = pnand %p1641_p9, %p1638_p8 }
  0x1a   :  { %1646 = shalt.err (!%p1643_p10)
}
  0x1b   :  { %s1647_s20 = scalar_lea.vmem %s1802_s24, 2048  ;;  %p1652_p12 = scmp.lt.s32.totalorder %s1802_s24, %s1802_s24 }
  0x1c   :  { %p1648_p11 = scmp.ne.s32.totalorder %s1802_s24, %s1647_s20  ;;  %p1653_p13 = scmp.lt.s32.totalorder %s1647_s20, %s1647_s20 }
  0x1e   :  { %p1654_p0 = por %p1653_p13, %p1652_p12 }
  0x20   :  { %p1655_p1 = pnand %p1654_p0, %p1648_p11 }
  0x22   :  { %1658 = shalt.err (!%p1655_p1)
}
  0x23   :  { %27 = dma.hbm_to_vmem [thread:$0]  %s2485_s0, 2048, %s1802_s24, [#allocation3], %s1757_s9, %s1757_s9, %s1758_s10  }
  0x24   :  { %s1759_s22 = smov [#allocation7]   ;;  %s1659_s27 = scalar_lea.hbm %s2487_s2, 128 }
  0x25   :  { %s45_s23 = sshll.u32 %s1759_s22, 4  ;;  %p1660_p2 = scmp.ne.s32.totalorder %s2487_s2, %s1659_s27  ;;  %s46_s23 = int_to_ptr.vmem [resolvable:$true] %s45_s23 }
  0x26   :  { %p1663_p3 = scmp.lt.u32.totalorder %s1659_s27, %s2487_s2 }
  0x28   :  { %p1665_p4 = pnand %p1663_p3, %p1660_p2 }
  0x2a   :  { %1668 = shalt.err (!%p1665_p4)
}
  0x2b   :  { %s1669_s8 = scalar_lea.vmem %s46_s23, 128  ;;  %p1674_p6 = scmp.lt.s32.totalorder %s46_s23, %s46_s23 }
  0x2c   :  { %p1670_p5 = scmp.ne.s32.totalorder %s46_s23, %s1669_s8  ;;  %p1675_p7 = scmp.lt.s32.totalorder %s1669_s8, %s1669_s8 }
  0x2e   :  { %p1676_p8 = por %p1675_p7, %p1674_p6 }
  0x30   :  { %p1677_p9 = pnand %p1676_p8, %p1670_p5 }
  0x32   :  { %1680 = shalt.err (!%p1677_p9)
}
  0x33   :  { %s1760_s0 = smov 64   ;;  %s1761_s24 = smov 4  }
  0x34   :  { %51 = dma.hbm_to_vmem [thread:$0]  %s2487_s2, 128, %s46_s23, [#allocation6], %s1760_s0, %s1760_s0, %s1761_s24  }
  0x35   :  { %1747 = dma.done.wait [#allocation3], 2048  }
  0x36   :  { %1748 = vsyncadd [#allocation3], 4294965248 }
  0x37   :  { %1749 = dma.done.wait [#allocation6], 2176  }
  0x38   :  { %1750 = vsyncadd [#allocation6], 4294965120  ;;  %v1503_v0 = vld [vmem:[%s2488_s3] sm:$0xff]   ;;  %v1850_v2 = vld [vmem:[#allocation5 + $0x8] sm:$0xff]  ;;  %vm114_vm0 = vcmask 130048   ;;  %v1762_v25 = vmov 0.0  }
  0x39   :  { %v1848_v1 = vld [vmem:[#allocation5] sm:$0xff]  ;;  %2502 = vst [vmem:[#allocation17_spill] sm:$0xff] %v1850_v2  ;;  %v1852_v3 = vld [vmem:[#allocation5 + $0x10] sm:$0xff]  ;;  %1425 = vmatprep.subr.bf16.mxu0 %v1503_v0  ;;  %v1856_v5 = vld [vmem:[#allocation5 + $0x18] sm:$0xff]  ;;  %1443 = vmatprep.subr.bf16.mxu1 %v1762_v25  ;;  %vm1763_vm1 = vmmov 0   ;;  %vm1028_vm15 = vcmask 1041409  }
  0x3a   :  { %2501 = vst [vmem:[#allocation16_spill] sm:$0xff] %v1848_v1  ;;  %2503 = vst [vmem:[#allocation18_spill] sm:$0xff] %v1852_v3  ;;  %v96_v4 = vpack.c.bf16 %v1850_v2, %v1848_v1  ;;  %v1858_v6 = vld [vmem:[#allocation5 + $0x20] sm:$0xff]  ;;  %v1860_v7 = vld [vmem:[#allocation5 + $0x28] sm:$0xff]  ;;  %1426 = vmatpush3.bf16.msra.mxu0 %v1503_v0  ;;  %v97_v8 = vpack.c.bf16 %v1856_v5, %v1852_v3  ;;  %1445 = vmatprep.mubr.msk.bf16.mxu1 %vm1763_vm1, %v1762_v25  ;;  %s1764_s2 = smov [#allocation9]   ;;  %s1765_s13 = smov [#allocation8]  }
  0x3b   :  { %2504 = vst [vmem:[#allocation19_spill] sm:$0xff] %v1856_v5  ;;  %v98_v9 = vpack.c.bf16 %v1860_v7, %v1858_v6  ;;  %v1869_v10 = vld [vmem:[#allocation5 + $0x30] sm:$0xff]  ;;  %v1871_v11 = vld [vmem:[#allocation5 + $0x38] sm:$0xff]  ;;  %v1873_v12 = vld [vmem:[#allocation5 + $0x40] sm:$0xff]  ;;  %1467 = vmatprep.subr.bf16.mxu0 %v1762_v25  ;;  %s1355_s3 = sshll.u32 %s1764_s2, 4  ;;  %s1345_s14 = sshll.u32 %s1765_s13, 4  ;;  %s1356_s3 = int_to_ptr.vmem [resolvable:$true] %s1355_s3  ;;  %s1346_s14 = int_to_ptr.vmem [resolvable:$true] %s1345_s14 }
  0x3c   :  { %1427 = vmatprep.mubr.msk.bf16.mxu0 %vm114_vm0, %v96_v4  ;;  %v1875_v13 = vld [vmem:[#allocation5 + $0x48] sm:$0xff]  ;;  %v99_v14 = vpack.c.bf16 %v1871_v11, %v1869_v10  ;;  %v1883_v16 = vld [vmem:[#allocation5 + $0x50] sm:$0xff]  ;;  %v1885_v17 = vld [vmem:[#allocation5 + $0x58] sm:$0xff]  ;;  %s1766_s15 = smov [#allocation11]   ;;  %s1681_s17 = scalar_lea.vmem %s1356_s3, 128 }
  0x3d   :  { %1428 = vmatmul.mubr.msk.bf16.vlgmr.msra.gmra.mrb[0].mxu0 %vm114_vm0, %v97_v8  ;;  %v100_v15 = vpack.c.bf16 %v1875_v13, %v1873_v12  ;;  %v1887_v18 = vld [vmem:[#allocation5 + $0x60] sm:$0xff]  ;;  %v1889_v19 = vld [vmem:[#allocation5 + $0x68] sm:$0xff]  ;;  %v101_v20 = vpack.c.bf16 %v1885_v17, %v1883_v16  ;;  %v1897_v22 = vld [vmem:[#allocation5 + $0x70] sm:$0xff]  ;;  %s1365_s16 = sshll.u32 %s1766_s15, 4  ;;  %p1682_p10 = scmp.ne.s32.totalorder %s1356_s3, %s1681_s17  ;;  %s1366_s16 = int_to_ptr.vmem [resolvable:$true] %s1365_s16 }
  0x3e   :  { %1431 = vmatprep.mubr.msk.bf16.mxu0 %vm114_vm0, %v98_v9  ;;  %v102_v21 = vpack.c.bf16 %v1889_v19, %v1887_v18  ;;  %v1899_v23 = vld [vmem:[#allocation5 + $0x78] sm:$0xff]  ;;  %v1504_v32 = vld [vmem:[#allocation7] sm:$0xff]   ;;  %v1923_v53 = vld [vmem:[#allocation2 + $0x8] sm:$0xff]  ;;  %p1686_p11 = scmp.lt.s32.totalorder %s1356_s3, %s1356_s3  ;;  %p1687_p12 = scmp.lt.s32.totalorder %s1681_s17, %s1681_s17 }
  0x3f   :  { %2505 = vst [vmem:[#allocation20_spill] sm:$0xff] %v1899_v23  ;;  %v103_v24 = vpack.c.bf16 %v1899_v23, %v1897_v22  ;;  %v1920_v51 = vld [vmem:[#allocation2] sm:$0xff]  ;;  %v1925_v55 = vld [vmem:[#allocation2 + $0x10] sm:$0xff]  ;;  %v661_v56 = vand.u32 2147483647, %v1923_v53  ;;  %v1929_v59 = vld [vmem:[#allocation2 + $0x18] sm:$0xff] }
  0x40   :  { %v660_v52 = vand.u32 2147483647, %v1920_v51  ;;  %v662_v57 = vand.u32 2147483647, %v1925_v55  ;;  %v1931_v61 = vld [vmem:[#allocation2 + $0x20] sm:$0xff]  ;;  %v1934_v0 = vld [vmem:[#allocation2 + $0x28] sm:$0xff]  ;;  %p1688_p13 = por %p1687_p12, %p1686_p11 }
  0x41   :  { %v677_v60 = vsub.f32 0.0, %v661_v56  ;;  %v663_v63 = vand.u32 2147483647, %v1929_v59  ;;  %v664_v4 = vand.u32 2147483647, %v1931_v61  ;;  %vm868_vm2 = vcmp.ge.f32.partialorder %v1920_v51, 0.0 }
  0x42   :  { %v676_v54 = vsub.f32 0.0, %v660_v52  ;;  %v678_v62 = vsub.f32 0.0, %v662_v57  ;;  %vm869_vm3 = vcmp.ge.f32.partialorder %v1923_v53, 0.0  ;;  %vm870_vm4 = vcmp.ge.f32.partialorder %v1925_v55, 0.0  ;;  %p1689_p0 = pnand %p1688_p13, %p1682_p10 }
  0x43   :  { %v694_v8 = vmul.f32 1.442695, %v677_v60  ;;  %v1967_v60 = vld [vmem:[#allocation2 + $0x60] sm:$0xff]  ;;  %vm871_vm5 = vcmp.ge.f32.partialorder %v1929_v59, 0.0  ;;  %vm872_vm6 = vcmp.ge.f32.partialorder %v1931_v61, 0.0  ;;  %vm873_vm7 = vcmp.ge.f32.partialorder %v1934_v0, 0.0 }
  0x44   :  { %v692_v58 = vmul.f32 1.442695, %v676_v54  ;;  %v696_v9 = vmul.f32 1.442695, %v678_v62  ;;  %vm880_vm13 = vcmp.ge.f32.partialorder %v1967_v60, 0.0 }
  0x45   :  { %1432 = vmatmul.mubr.msk.bf16.gmra.mrb[4].mxu0 %vm114_vm0, %v99_v14  ;;  %v679_v14 = vsub.f32 0.0, %v663_v63  ;;  %v1969_v63 = vld [vmem:[#allocation2 + $0x58] sm:$0xff] }
  0x46   :  { %1435 = vmatprep.mubr.msk.bf16.mxu0 %vm114_vm0, %v100_v15  ;;  %1505 = vpow2.f32 %v692_v58  ;;  %v665_v15 = vand.u32 2147483647, %v1934_v0  ;;  %vm879_vm14 = vcmp.ge.f32.partialorder %v1969_v63, 0.0 }
  0x47   :  { %1507 = vpow2.f32 %v694_v8 }
  0x48   :  { %1509 = vpow2.f32 %v696_v9 }
  0x4d   :  { %1436 = vmatmul.mubr.msk.bf16.gmra.mrb[8].mxu0 %vm114_vm0, %v101_v20  ;;  %v1938_v20 = vld [vmem:[#allocation2 + $0x30] sm:$0xff] }
  0x4e   :  { %1439 = vmatprep.mubr.msk.bf16.mxu0 %vm114_vm0, %v102_v21  ;;  %v1940_v21 = vld [vmem:[#allocation2 + $0x40] sm:$0xff]  ;;  %vm874_vm8 = vcmp.ge.f32.partialorder %v1938_v20, 0.0 }
  0x4f   :  { %vm876_vm9 = vcmp.ge.f32.partialorder %v1940_v21, 0.0 }
  0x55   :  { %1440 = vmatmul.mubr.msk.bf16.gmra.mrb[12].mxu0 %vm114_vm0, %v103_v24  ;;  %v680_v24 = vsub.f32 0.0, %v664_v4 }
  0x56   :  { %1469 = vmatprep.mubr.msk.bf16.mxu0 %vm1763_vm1, %v1762_v25 }
 0x110   :  { %v1429_v26 = vpop.f32.mrb[0].mxu0 }
 0x111   :  { %v173_v27 = vpop.f32.mrb[1].mxu0 }
 0x112   :  { %v1430_v28 = vpop.f32.mrb[2].mxu0 }
 0x113   :  { %v237_v29 = vpack.c.bf16 %v1430_v28, %v1429_v26  ;;  %v176_v30 = vpop.f32.mrb[3].mxu0  ;;  %v666_v26 = vand.u32 2147483647, %v1938_v20  ;;  %v681_v28 = vsub.f32 0.0, %v665_v15  ;;  %v740_v15 = vmul.f32 %v1848_v1, %v1920_v51  ;;  %v1996_v1 = vld [vmem:[#allocation2 + $0x70] sm:$0xff] }
 0x114   :  { %v236_v31 = vpack.c.bf16 %v176_v30, %v173_v27  ;;  %v698_v27 = vmul.f32 1.442695, %v679_v14  ;;  %v724_v14 = vmax.f32 %v1920_v51, 0.0 }
 0x116   :  { %1444 = vmatpush3.bf16.msra.mxu1 %v236_v31  ;;  %v700_v31 = vmul.f32 1.442695, %v680_v24  ;;  %1511 = vpow2.f32 %v698_v27  ;;  %v672_v24 = vand.u32 2147483647, %v1967_v60 }
 0x117   :  { %1449 = vmatprep.subr.bf16.mxu1 %v1762_v25 }
 0x118   :  { %v1433_v33 = vpop.f32.mrb[4].mxu0  ;;  %1513 = vpow2.f32 %v700_v31  ;;  %v741_v31 = vmul.f32 %v1850_v2, %v1923_v53 }
 0x119   :  { %v189_v34 = vpop.f32.mrb[5].mxu0  ;;  %1446 = vmatmul.mubr.msk.bf16.vlgmr.msra.gmra.mrb[0].mxu1 %vm114_vm0, %v1504_v32 }
 0x11a   :  { %v1434_v35 = vpop.f32.mrb[6].mxu0  ;;  %1450 = vmatpush3.bf16.msra.mxu1 %v237_v29  ;;  %1451 = vmatprep.mubr.msk.bf16.mxu1 %vm1763_vm1, %v1762_v25  ;;  %v668_v29 = vand.u32 2147483647, %v1940_v21 }
 0x11b   :  { %v239_v36 = vpack.c.bf16 %v1434_v35, %v1433_v33  ;;  %v192_v37 = vpop.f32.mrb[7].mxu0  ;;  %1455 = vmatprep.subr.bf16.mxu1 %v1762_v25  ;;  %v682_v33 = vsub.f32 0.0, %v666_v26 }
 0x11c   :  { %v238_v38 = vpack.c.bf16 %v192_v37, %v189_v34  ;;  %v702_v34 = vmul.f32 1.442695, %v681_v28  ;;  %v684_v35 = vsub.f32 0.0, %v668_v29  ;;  %v671_v28 = vand.u32 2147483647, %v1969_v63 }
 0x11e   :  { %1515 = vpow2.f32 %v702_v34 }
 0x120   :  { %v1437_v39 = vpop.f32.mrb[8].mxu0 }
 0x121   :  { %v205_v40 = vpop.f32.mrb[9].mxu0  ;;  %1452 = vmatmul.mubr.msk.bf16.vlgmr.msra.gmra.mrb[4].mxu1 %vm114_vm0, %v1504_v32 }
 0x122   :  { %1456 = vmatpush3.bf16.msra.mxu1 %v238_v38  ;;  %v1438_v41 = vpop.f32.mrb[10].mxu0  ;;  %1457 = vmatprep.mubr.msk.bf16.mxu1 %vm1763_vm1, %v1762_v25  ;;  %v704_v38 = vmul.f32 1.442695, %v682_v33 }
 0x123   :  { %v241_v42 = vpack.c.bf16 %v1438_v41, %v1437_v39  ;;  %v208_v43 = vpop.f32.mrb[11].mxu0  ;;  %1461 = vmatprep.subr.bf16.mxu1 %v1762_v25  ;;  %v1947_v39 = vld [vmem:[#allocation2 + $0x48] sm:$0xff] }
 0x124   :  { %v240_v44 = vpack.c.bf16 %v208_v43, %v205_v40  ;;  %v708_v40 = vmul.f32 1.442695, %v684_v35  ;;  %vm877_vm11 = vcmp.ge.f32.partialorder %v1947_v39, 0.0 }
 0x126   :  { %1468 = vmatpush3.bf16.msra.mxu0 %v240_v44  ;;  %v669_v44 = vand.u32 2147483647, %v1947_v39 }
 0x127   :  { %1479 = vmatprep.subr.bf16.mxu0 %v1762_v25 }
 0x128   :  { %v1441_v45 = vpop.f32.mrb[12].mxu0 }
 0x129   :  { %1458 = vmatmul.mubr.msk.bf16.vlgmr.msra.gmra.mrb[8].mxu1 %vm114_vm0, %v1504_v32  ;;  %v221_v46 = vpop.f32.mrb[13].mxu0  ;;  %1470 = vmatmul.mubr.msk.bf16.vlgmr.msra.gmra.mrb[16].mxu0 %vm114_vm0, %v1504_v32 }
 0x12a   :  { %1462 = vmatpush3.bf16.msra.mxu1 %v239_v36  ;;  %1463 = vmatprep.mubr.msk.bf16.mxu1 %vm1763_vm1, %v1762_v25  ;;  %v1442_v47 = vpop.f32.mrb[14].mxu0 }
 0x12b   :  { %1473 = vmatprep.subr.bf16.mxu1 %v1762_v25  ;;  %v243_v48 = vpack.c.bf16 %v1442_v47, %v1441_v45  ;;  %v224_v49 = vpop.f32.mrb[15].mxu0  ;;  %1481 = vmatprep.mubr.msk.bf16.mxu0 %vm1763_vm1, %v1762_v25 }
 0x12c   :  { %v242_v50 = vpack.c.bf16 %v224_v49, %v221_v46 }
 0x12e   :  { %1480 = vmatpush3.bf16.msra.mxu0 %v242_v50  ;;  %v1960_v50 = vld [vmem:[#allocation2 + $0x50] sm:$0xff] }
 0x12f   :  { %v670_v58 = vand.u32 2147483647, %v1960_v50  ;;  %vm878_vm12 = vcmp.ge.f32.partialorder %v1960_v50, 0.0 }
 0x131   :  { %1464 = vmatmul.mubr.msk.bf16.vlgmr.msra.gmra.mrb[12].mxu1 %vm114_vm0, %v1504_v32  ;;  %1482 = vmatmul.mubr.msk.bf16.vlgmr.msra.gmra.mrb[20].mxu0 %vm114_vm0, %v1504_v32  ;;  %v686_v27 = vsub.f32 0.0, %v670_v58  ;;  %v687_v58 = vsub.f32 0.0, %v671_v28 }
 0x132   :  { %1474 = vmatpush3.bf16.msra.mxu1 %v241_v42  ;;  %1475 = vmatprep.mubr.msk.bf16.mxu1 %vm1763_vm1, %v1762_v25 }
 0x133   :  { %1485 = vmatprep.subr.bf16.mxu1 %v1762_v25  ;;  %v714_v51 = vmul.f32 1.442695, %v687_v58 }
 0x139   :  { %1476 = vmatmul.mubr.msk.bf16.vlgmr.msra.gmra.mrb[16].mxu1 %vm114_vm0, %v1504_v32 }
 0x13a   :  { %1486 = vmatpush3.bf16.msra.mxu1 %v243_v48  ;;  %1487 = vmatprep.mubr.msk.bf16.mxu1 %vm1763_vm1, %v1762_v25  ;;  %v1942_v25 = vld [vmem:[#allocation2 + $0x38] sm:$0xff]  ;;  %v685_v48 = vsub.f32 0.0, %v669_v44  ;;  %v1992_v44 = vld [vmem:[#allocation2 + $0x68] sm:$0xff] }
 0x13b   :  { %v667_v30 = vand.u32 2147483647, %v1942_v25  ;;  %vm875_vm10 = vcmp.ge.f32.partialorder %v1942_v25, 0.0  ;;  %vm881_vm1 = vcmp.ge.f32.partialorder %v1992_v44, 0.0 }
 0x13c   :  { %v710_v56 = vmul.f32 1.442695, %v685_v48 }
 0x13d   :  { %v683_v36 = vsub.f32 0.0, %v667_v30  ;;  %v725_v30 = vmax.f32 %v1923_v53, 0.0 }
 0x13f   :  { %v706_v42 = vmul.f32 1.442695, %v683_v36  ;;  %v757_v2 = vsub.f32 %v725_v30, %v741_v31 }
 0x141   :  { %1488 = vmatmul.mubr.msk.bf16.vlgmr.msra.gmra.mrb[20].mxu1 %vm114_vm0, %v1504_v32  ;;  %v1506_v32 = vpop.eup %1505 }
 0x142   :  { %v772_v37 = vadd.f32 1.0, %v1506_v32  ;;  %v1949_v41 = vpop.eup %1507 }
 0x143   :  { %v1951_v43 = vpop.eup %1509  ;;  %v773_v45 = vadd.f32 1.0, %v1949_v41 }
 0x144   :  { %1517 = vrcp.f32 %v772_v37  ;;  %v774_v46 = vadd.f32 1.0, %v1951_v43  ;;  %v1956_v47 = vpop.eup %1511 }
 0x145   :  { %1519 = vpow2.f32 %v704_v38  ;;  %v1958_v49 = vpop.eup %1513  ;;  %v775_v52 = vadd.f32 1.0, %v1956_v47  ;;  %v756_v38 = vsub.f32 %v724_v14, %v740_v15  ;;  %v673_v15 = vand.u32 2147483647, %v1992_v44 }
 0x146   :  { %1521 = vpow2.f32 %v708_v40  ;;  %v1963_v54 = vpop.eup %1515  ;;  %v776_v57 = vadd.f32 1.0, %v1958_v49 }
 0x147   :  { %1523 = vpow2.f32 %v706_v42  ;;  %v777_v8 = vadd.f32 1.0, %v1963_v54  ;;  %v688_v42 = vsub.f32 0.0, %v672_v24  ;;  %v2005_v24 = vld [vmem:[#allocation2 + $0x78] sm:$0xff] }
 0x148   :  { %1525 = vlog2.f32 %v772_v37  ;;  %2507 = vst [vmem:[#allocation22_spill] sm:$0xff] %v2005_v24  ;;  %v675_v31 = vand.u32 2147483647, %v2005_v24 }
 0x149   :  { %1527 = vlog2.f32 %v773_v45 }
 0x14a   :  { %1529 = vrcp.f32 %v773_v45 }
 0x14b   :  { %1531 = vrcp.f32 %v774_v46 }
 0x14c   :  { %1533 = vrcp.f32 %v775_v52 }
 0x14d   :  { %1535 = vpow2.f32 %v710_v56  ;;  %v712_v56 = vmul.f32 1.442695, %v686_v27  ;;  %v716_v27 = vmul.f32 1.442695, %v688_v42  ;;  %v727_v42 = vmax.f32 %v1929_v59, 0.0 }
 0x14e   :  { %v1518_v62 = vpop.eup %1517  ;;  %1537 = vrcp.f32 %v776_v57 }
 0x14f   :  { %v1971_v4 = vpop.eup %1519  ;;  %v884_v35 = vmul.f32 %v1518_v62, %v1506_v32  ;;  %1539 = vrcp.f32 %v777_v8 }
 0x150   :  { %v1974_v9 = vpop.eup %1521  ;;  %v778_v33 = vadd.f32 1.0, %v1971_v4  ;;  %1541 = vlog2.f32 %v774_v46 }
 0x151   :  { %v1980_v26 = vpop.eup %1523  ;;  %v780_v36 = vadd.f32 1.0, %v1974_v9  ;;  %1543 = vlog2.f32 %v775_v52  ;;  %v2000_v14 = vsel %vm868_vm2, %v1518_v62, %v884_v35  ;;  %v742_v35 = vmul.f32 %v1852_v3, %v1925_v55 }
 0x152   :  { %v1526_v29 = vpop.eup %1525  ;;  %v779_v40 = vadd.f32 1.0, %v1980_v26  ;;  %1545 = vrcp.f32 %v778_v33  ;;  %2506 = vst [vmem:[#allocation21_spill] sm:$0xff] %v2000_v14  ;;  %vm1030_vm2 = vcmask 1042434  }
 0x153   :  { %v1528_v34 = vpop.eup %1527  ;;  %v789_v48 = vmul.f32 0.6931472, %v1526_v29  ;;  %1547 = vrcp.f32 %v780_v36 }
 0x154   :  { %v1989_v37 = vpop.eup %1529  ;;  %v791_v32 = vmul.f32 0.6931472, %v1528_v34  ;;  %1549 = vrcp.f32 %v779_v40 }
 0x155   :  { %v1994_v45 = vpop.eup %1531  ;;  %v885_v46 = vmul.f32 %v1989_v37, %v1949_v41  ;;  %v820_v29 = vadd.f32 %v789_v48, %v756_v38  ;;  %1551 = vpow2.f32 %v712_v56  ;;  %v674_v41 = vand.u32 2147483647, %v1996_v1 }
 0x156   :  { %v886_v52 = vmul.f32 %v1994_v45, %v1951_v43  ;;  %v1534_v28 = vpop.eup %1533  ;;  %v821_v30 = vadd.f32 %v791_v32, %v757_v2  ;;  %1553 = vlog2.f32 %v776_v57  ;;  %v726_v43 = vmax.f32 %v1925_v55, 0.0 }
 0x157   :  { %v2012_v62 = vpop.eup %1535  ;;  %1555 = vlog2.f32 %v777_v8  ;;  %v689_v38 = vsub.f32 0.0, %v673_v15  ;;  %v743_v48 = vmul.f32 %v1856_v5, %v1929_v59  ;;  %v887_v2 = vmul.f32 %v1534_v28, %v1956_v47 }
 0x158   :  { %v1538_v34 = vpop.eup %1537  ;;  %1557 = vpow2.f32 %v716_v27  ;;  %v948_v57 = vsel %vm114_vm0, %v820_v29, 0.0  ;;  %v781_v58 = vadd.f32 1.0, %v2012_v62  ;;  %v690_v32 = vsub.f32 0.0, %v674_v41 }
 0x159   :  { %v1540_v56 = vpop.eup %1539  ;;  %1559 = vpow2.f32 %v714_v51  ;;  %v888_v8 = vmul.f32 %v1538_v34, %v1958_v49  ;;  %v691_v15 = vsub.f32 0.0, %v675_v31  ;;  %v949_v5 = vsel %vm114_vm0, %v821_v30, 0.0 }
 0x15a   :  { %v1542_v14 = vpop.eup %1541  ;;  %1561 = vlog2.f32 %v778_v33  ;;  %v758_v23 = vsub.f32 %v726_v43, %v742_v35  ;;  %v718_v47 = vmul.f32 1.442695, %v689_v38  ;;  %v759_v24 = vsub.f32 %v727_v42, %v743_v48 }
 0x15b   :  { %v1544_v3 = vpop.eup %1543  ;;  %1563 = vlog2.f32 %v780_v36  ;;  %v889_v29 = vmul.f32 %v1540_v56, %v1963_v54  ;;  %v728_v41 = vmax.f32 %v1931_v61, 0.0  ;;  %v744_v49 = vmul.f32 %v1858_v6, %v1931_v61 }
 0x15c   :  { %v1546_v27 = vpop.eup %1545  ;;  %1565 = vlog2.f32 %v779_v40  ;;  %v720_v33 = vmul.f32 1.442695, %v690_v32  ;;  %v793_v36 = vmul.f32 0.6931472, %v1542_v14  ;;  %v795_v31 = vmul.f32 0.6931472, %v1544_v3 }
 0x15d   :  { %v2030_v51 = vpop.eup %1547  ;;  %1567 = vrcp.f32 %v781_v58  ;;  %v722_v43 = vmul.f32 1.442695, %v691_v15  ;;  %v2042_v54 = vsel %vm869_vm3, %v1989_v37, %v885_v46  ;;  %v729_v40 = vmax.f32 %v1934_v0, 0.0 }
 0x15e   :  { %v2035_v30 = vpop.eup %1549  ;;  %1569 = vlog2.f32 %v781_v58  ;;  %2508 = vst [vmem:[#allocation23_spill] sm:$0xff] %v2042_v54  ;;  %v745_v6 = vmul.f32 %v1860_v7, %v1934_v0  ;;  %v2047_v42 = vadd.f32 %v949_v5, %v948_v57  ;;  %v2052_v3 = vsel %vm870_vm4, %v1994_v45, %v886_v52 }
 0x15f   :  { %v2037_v35 = vpop.eup %1551  ;;  %1571 = vpow2.f32 %v718_v47  ;;  %2509 = vst [vmem:[#allocation24_spill] sm:$0xff] %v2052_v3  ;;  %v2056_v14 = vsel %vm871_vm5, %v1534_v28, %v887_v2  ;;  %v2060_v53 = vsel %vm872_vm6, %v1538_v34, %v888_v8  ;;  %v760_v46 = vsub.f32 %v728_v41, %v744_v49 }
 0x160   :  { %v1554_v38 = vpop.eup %1553  ;;  %2510 = vst [vmem:[#allocation25_spill] sm:$0xff] %v2056_v14  ;;  %2511 = vst [vmem:[#allocation26_spill] sm:$0xff] %v2060_v53  ;;  %v2064_v7 = vsel %vm873_vm7, %v1540_v56, %v889_v29  ;;  %1573 = vpow2.f32 %v720_v33  ;;  %v822_v55 = vadd.f32 %v793_v36, %v758_v23  ;;  %v823_v45 = vadd.f32 %v795_v31, %v759_v24 }
 0x161   :  { %v1556_v37 = vpop.eup %1555  ;;  %2512 = vst [vmem:[#allocation27_spill] sm:$0xff] %v2064_v7  ;;  %v890_v59 = vmul.f32 %v1546_v27, %v1971_v4  ;;  %1575 = vpow2.f32 %v722_v43  ;;  %v797_v61 = vmul.f32 0.6931472, %v1554_v38  ;;  %v761_v28 = vsub.f32 %v729_v40, %v745_v6 }
 0x162   :  { %v2067_v5 = vpop.eup %1557  ;;  %v730_v34 = vmax.f32 %v1938_v20, 0.0  ;;  %v746_v0 = vmul.f32 %v1869_v10, %v1938_v20  ;;  %v799_v2 = vmul.f32 0.6931472, %v1556_v37  ;;  %v732_v56 = vmax.f32 %v1940_v21, 0.0 }
 0x163   :  { %v2070_v52 = vpop.eup %1559  ;;  %v748_v23 = vmul.f32 %v1873_v12, %v1940_v21  ;;  %v782_v24 = vadd.f32 1.0, %v2037_v35  ;;  %v2081_v57 = vmul.f32 %v2030_v51, %v1974_v9  ;;  %v731_v58 = vmax.f32 %v1942_v25, 0.0 }
 0x164   :  { %v1562_v48 = vpop.eup %1561  ;;  %v747_v32 = vmul.f32 %v1871_v11, %v1942_v25  ;;  %v784_v10 = vadd.f32 1.0, %v2067_v5  ;;  %v957_v15 = vsel %vm114_vm0, %v822_v55, 0.0  ;;  %v958_v47 = vsel %vm114_vm0, %v823_v45, 0.0 }
 0x165   :  { %v1564_v4 = vpop.eup %1563  ;;  %v2091_v12 = vsel %vm874_vm8, %v1546_v27, %v890_v59  ;;  %v783_v29 = vadd.f32 1.0, %v2070_v52  ;;  %v824_v41 = vadd.f32 %v797_v61, %v760_v46  ;;  %v762_v49 = vsub.f32 %v730_v34, %v746_v0 }
 0x166   :  { %v1566_v8 = vpop.eup %1565  ;;  %2513 = vst [vmem:[#allocation28_spill] sm:$0xff] %v2091_v12  ;;  %v733_v33 = vmax.f32 %v1947_v39, 0.0  ;;  %v749_v11 = vmul.f32 %v1875_v13, %v1947_v39  ;;  %v825_v31 = vadd.f32 %v799_v2, %v761_v28  ;;  %v801_v43 = vmul.f32 0.6931472, %v1562_v48 }
 0x167   :  { %v2094_v9 = vpop.eup %1567  ;;  %v764_v40 = vsub.f32 %v732_v56, %v748_v23  ;;  %1577 = vrcp.f32 %v782_v24  ;;  %v805_v20 = vmul.f32 0.6931472, %v1564_v4  ;;  %v763_v27 = vsub.f32 %v731_v58, %v747_v32 }
 0x168   :  { %v1570_v36 = vpop.eup %1569  ;;  %v803_v38 = vmul.f32 0.6931472, %v1566_v8  ;;  %1579 = vrcp.f32 %v784_v10  ;;  %v959_v37 = vadd.f32 %v958_v47, %v957_v15  ;;  %v2103_v46 = vmul.f32 %v2035_v30, %v1980_v26 }
 0x169   :  { %v2099_v6 = vpop.eup %1571  ;;  %v2107_v55 = vmul.f32 %v2094_v9, %v2012_v62  ;;  %1581 = vrcp.f32 %v783_v29  ;;  %v966_v45 = vsel %vm114_vm0, %v824_v41, 0.0  ;;  %v765_v59 = vsub.f32 %v733_v33, %v749_v11 }
 0x16a   :  { %v2109_v13 = vpop.eup %1573  ;;  %v807_v61 = vmul.f32 0.6931472, %v1570_v36  ;;  %1583 = vlog2.f32 %v782_v24  ;;  %v967_v34 = vsel %vm114_vm0, %v825_v31, 0.0  ;;  %v826_v0 = vadd.f32 %v801_v43, %v762_v49 }
 0x16b   :  { %v2112_v28 = vpop.eup %1575  ;;  %v785_v26 = vadd.f32 1.0, %v2099_v6  ;;  %1585 = vlog2.f32 %v783_v29  ;;  %v828_v48 = vadd.f32 %v805_v20, %v764_v40  ;;  %v827_v2 = vadd.f32 %v803_v38, %v763_v27 }
 0x16c   :  { %v734_v62 = vmax.f32 %v1960_v50, 0.0  ;;  %1587 = vlog2.f32 %v784_v10  ;;  %v750_v56 = vmul.f32 %v1883_v16, %v1960_v50  ;;  %v736_v23 = vmax.f32 %v1967_v60, 0.0 }
 0x16d   :  { %v786_v24 = vadd.f32 1.0, %v2109_v13  ;;  %1589 = vlog2.f32 %v785_v26  ;;  %v829_v4 = vadd.f32 %v807_v61, %v765_v59  ;;  %v752_v58 = vmul.f32 %v1887_v18, %v1967_v60 }
 0x16e   :  { %v735_v32 = vmax.f32 %v1969_v63, 0.0  ;;  %v787_v8 = vadd.f32 1.0, %v2112_v28  ;;  %v951_v15 = vrot.slane %v2047_v42, 4  ;;  %v960_v10 = vrot.slane %v959_v37, 4 }
 0x16f   :  { %1591 = vlog2.f32 %v786_v24  ;;  %v968_v47 = vadd.f32 %v967_v34, %v966_v45  ;;  %v751_v16 = vmul.f32 %v1885_v17, %v1969_v63  ;;  %v975_v29 = vsel %vm114_vm0, %v826_v0, 0.0  ;;  %v2514_v0 = vld [vmem:[#allocation22_spill] sm:$0xff] }
 0x170   :  { %1593 = vlog2.f32 %v787_v8  ;;  %v976_v41 = vsel %vm114_vm0, %v827_v2, 0.0  ;;  %v952_v18 = vadd.f32 %v951_v15, %v2047_v42  ;;  %v984_v36 = vsel %vm114_vm0, %v828_v48, 0.0 }
 0x171   :  { %v2130_v49 = vpop.eup %1577  ;;  %v969_v33 = vrot.slane %v968_v47, 4  ;;  %v977_v11 = vadd.f32 %v976_v41, %v975_v29  ;;  %v737_v43 = vmax.f32 %v1992_v44, 0.0  ;;  %v753_v17 = vmul.f32 %v1889_v19, %v1992_v44 }
 0x172   :  { %v2134_v31 = vpop.eup %1579  ;;  %v961_v40 = vadd.f32 %v960_v10, %v959_v37  ;;  %v985_v20 = vsel %vm114_vm0, %v829_v4, 0.0  ;;  %v766_v38 = vsub.f32 %v734_v62, %v750_v56  ;;  %v738_v45 = vmax.f32 %v1996_v1, 0.0  ;;  %v2515_v4 = vld [vmem:[#allocation20_spill] sm:$0xff] }
 0x173   :  { %v2140_v27 = vpop.eup %1581  ;;  %v754_v42 = vmul.f32 %v1897_v22, %v1996_v1  ;;  %v978_v59 = vrot.slane %v977_v11, 4  ;;  %v767_v34 = vsub.f32 %v735_v32, %v751_v16  ;;  %v739_v19 = vmax.f32 %v2514_v0, 0.0 }
 0x174   :  { %v1584_v61 = vpop.eup %1583  ;;  %v953_v37 = vrot.slane %v952_v18, 2  ;;  %v986_v48 = vadd.f32 %v985_v20, %v984_v36  ;;  %v755_v62 = vmul.f32 %v2515_v4, %v2514_v0  ;;  %v768_v56 = vsub.f32 %v736_v23, %v752_v58 }
 0x175   :  { %v1586_v2 = vpop.eup %1585  ;;  %v809_v15 = vmul.f32 0.6931472, %v1584_v61  ;;  %v970_v10 = vadd.f32 %v969_v33, %v968_v47  ;;  %1595 = vrcp.f32 %v785_v26  ;;  %v769_v22 = vsub.f32 %v737_v43, %v753_v17 }
 0x176   :  { %v1588_v29 = vpop.eup %1587  ;;  %v811_v41 = vmul.f32 0.6931472, %v1586_v2  ;;  %v962_v12 = vrot.slane %v961_v40, 2  ;;  %v770_v32 = vsub.f32 %v738_v45, %v754_v42  ;;  %v979_v14 = vadd.f32 %v978_v59, %v977_v11 }
 0x177   :  { %v1590_v7 = vpop.eup %1589  ;;  %v813_v16 = vmul.f32 0.6931472, %v1588_v29  ;;  %v830_v53 = vadd.f32 %v809_v15, %v766_v38  ;;  %v954_v3 = vadd.f32 %v953_v37, %v952_v18  ;;  %v987_v54 = vrot.slane %v986_v48, 4 }
 0x178   :  { %v815_v36 = vmul.f32 0.6931472, %v1590_v7  ;;  %v831_v20 = vadd.f32 %v811_v41, %v767_v34  ;;  %1597 = vrcp.f32 %v786_v24  ;;  %v771_v23 = vsub.f32 %v739_v19, %v755_v62 }
 0x179   :  { %v1592_v4 = vpop.eup %1591  ;;  %v832_v58 = vadd.f32 %v813_v16, %v768_v56  ;;  %v971_v47 = vrot.slane %v970_v10, 2  ;;  %1599 = vrcp.f32 %v787_v8  ;;  %v963_v17 = vadd.f32 %v962_v12, %v961_v40 }
 0x17a   :  { %v1594_v33 = vpop.eup %1593  ;;  %v817_v26 = vmul.f32 0.6931472, %v1592_v4  ;;  %v833_v43 = vadd.f32 %v815_v36, %v769_v22  ;;  %v980_v2 = vrot.slane %v979_v14, 2  ;;  %v993_v45 = vsel %vm114_vm0, %v830_v53, 0.0 }
 0x17b   :  { %v819_v61 = vmul.f32 0.6931472, %v1594_v33  ;;  %v994_v11 = vsel %vm114_vm0, %v831_v20, 0.0  ;;  %v955_v38 = vrot.slane %v954_v3, 1  ;;  %v988_v18 = vadd.f32 %v987_v54, %v986_v48 }
 0x17c   :  { %v834_v7 = vadd.f32 %v817_v26, %v770_v32  ;;  %v995_v42 = vadd.f32 %v994_v11, %v993_v45  ;;  %v972_v24 = vadd.f32 %v971_v47, %v970_v10  ;;  %v1002_v34 = vsel %vm114_vm0, %v832_v58, 0.0  ;;  %v2516_v26 = vld [vmem:[#allocation16_spill] sm:$0xff]  ;;  %v2517_v11 = vld [vmem:[#allocation17_spill] sm:$0xff] }
 0x17d   :  { %v835_v59 = vadd.f32 %v819_v61, %v771_v23  ;;  %v1003_v19 = vsel %vm114_vm0, %v833_v43, 0.0  ;;  %v964_v8 = vrot.slane %v963_v17, 1  ;;  %v2160_v53 = vsel %vm876_vm9, %v2030_v51, %v2081_v57 }
 0x17e   :  { %v996_v37 = vrot.slane %v995_v42, 4  ;;  %v1004_v62 = vadd.f32 %v1003_v19, %v1002_v34  ;;  %v1011_v12 = vsel %vm114_vm0, %v834_v7, 0.0  ;;  %v2166_v54 = vsel %vm875_vm10, %v2035_v30, %v2103_v46 }
 0x17f   :  { %v981_v40 = vadd.f32 %v980_v2, %v979_v14  ;;  %v1012_v48 = vsel %vm114_vm0, %v835_v59, 0.0  ;;  %v2169_v56 = vpop.eup %1595  ;;  %v989_v15 = vrot.slane %v988_v18, 2  ;;  %v2175_v21 = vsel %vm877_vm11, %v2094_v9, %v2107_v55 }
 0x180   :  { %v997_v10 = vadd.f32 %v996_v37, %v995_v42  ;;  %v1005_v29 = vrot.slane %v1004_v62, 4  ;;  %v1013_v22 = vadd.f32 %v1012_v48, %v1011_v12  ;;  %v894_v25 = vmul.f32 %v2130_v49, %v2037_v35 }
 0x181   :  { %v896_v51 = vmul.f32 %v2134_v31, %v2067_v5  ;;  %v973_v30 = vrot.slane %v972_v24, 1  ;;  %v956_v14 = vadd.f32 %v955_v38, %v954_v3  ;;  %v965_v57 = vadd.f32 %v964_v8, %v963_v17 }
 0x182   :  { %v1006_v46 = vadd.f32 %v1005_v29, %v1004_v62  ;;  %v1014_v41 = vrot.slane %v1013_v22, 4  ;;  %v1598_v32 = vpop.eup %1597  ;;  %v895_v39 = vmul.f32 %v2140_v27, %v2070_v52  ;;  %v982_v55 = vrot.slane %v981_v40, 1  ;;  %v2518_v29 = vld [vmem:[#allocation21_spill] sm:$0xff] }
 0x183   :  { %v1600_v9 = vpop.eup %1599  ;;  %v990_v16 = vadd.f32 %v989_v15, %v988_v18  ;;  %v998_v5 = vrot.slane %v997_v10, 2  ;;  %v974_v4 = vadd.f32 %v973_v30, %v972_v24  ;;  %v2189_v47 = vsel %vm878_vm12, %v2130_v49, %v894_v25  ;;  %v2519_v30 = vld [vmem:[#allocation18_spill] sm:$0xff] }
 0x184   :  { %v1007_v36 = vrot.slane %v1006_v46, 2  ;;  %v1015_v23 = vadd.f32 %v1014_v41, %v1013_v22  ;;  %v2194_v52 = vsel %vm880_vm13, %v2134_v31, %v896_v51  ;;  %v1029_v33 = vsel %vm1028_vm15, %v965_v57, %v956_v14 }
 0x185   :  { %v2202_v2 = vsel %vm879_vm14, %v2140_v27, %v895_v39  ;;  %v983_v50 = vadd.f32 %v982_v55, %v981_v40  ;;  %v991_v49 = vrot.slane %v990_v16, 1  ;;  %v999_v45 = vadd.f32 %v998_v5, %v997_v10 }
 0x186   :  { %v1008_v60 = vadd.f32 %v1007_v36, %v1006_v46  ;;  %v1016_v38 = vrot.slane %v1015_v23, 2  ;;  %v1031_v18 = vsel %vm1030_vm2, %v974_v4, %v1029_v33  ;;  %v897_v42 = vmul.f32 %v2169_v56, %v2099_v6 }
 0x187   :  { %vm882_vm3 = vcmp.ge.f32.partialorder %v1996_v1, 0.0  ;;  %v898_v63 = vmul.f32 %v1598_v32, %v2109_v13  ;;  %vm883_vm4 = vcmp.ge.f32.partialorder %v2514_v0, 0.0  ;;  %v899_v24 = vmul.f32 %v1600_v9, %v2112_v28 }
 0x188   :  { %vm1032_vm5 = vcmask 1043459   ;;  %v992_v19 = vadd.f32 %v991_v49, %v990_v16  ;;  %v1000_v8 = vrot.slane %v999_v45, 1  ;;  %v1009_v37 = vrot.slane %v1008_v60, 1 }
 0x189   :  { %v1033_v62 = vsel %vm1032_vm5, %v983_v50, %v1031_v18  ;;  %v2213_v15 = vadd.f32 %v1016_v38, %v1015_v23  ;;  %v2218_v10 = vsel %vm881_vm1, %v2169_v56, %v897_v42  ;;  %v2222_v28 = vsel %vm882_vm3, %v1598_v32, %v898_v63  ;;  %v2520_v32 = vld [vmem:[#allocation23_spill] sm:$0xff] }
 0x18a   :  { %vm1034_vm6 = vcmask 1044484   ;;  %vm1036_vm7 = vcmask 1045509   ;;  %v2229_v44 = vsel %vm883_vm4, %v1600_v9, %v899_v24  ;;  %v1001_v56 = vadd.f32 %v1000_v8, %v999_v45 }
 0x18b   :  { %v1035_v1 = vsel %vm1034_vm6, %v992_v19, %v1033_v62  ;;  %v1018_v55 = vrot.slane %v2213_v15, 1  ;;  %vm1038_vm8 = vcmask 1046534   ;;  %vm1040_vm9 = vcmask 1047559  }
 0x1ec   :  { %v286_v35 = vpop.f32.mrb[0].mxu1 }
 0x1ed   :  { %v580_v3 = vmul.f32 0.0010405828, %v286_v35  ;;  %v1447_v20 = vpop.f32.mrb[1].mxu1  ;;  %v2234_v35 = vadd.f32 %v1009_v37, %v1008_v60  ;;  %v2254_v37 = vsel %vm1036_vm7, %v1001_v56, %v1035_v1 }
 0x1ee   :  { %v289_v58 = vpop.f32.mrb[2].mxu1 }
 0x1ef   :  { %v596_v43 = vsub.f32 %v580_v3, %v2516_v26  ;;  %v581_v17 = vmul.f32 0.0010405828, %v289_v58  ;;  %v1448_v61 = vpop.f32.mrb[3].mxu1  ;;  %v2521_v3 = vld [vmem:[#allocation19_spill] sm:$0xff] }
 0x1f1   :  { %v612_v31 = vand.u32 2147483647, %v596_v43  ;;  %v597_v7 = vsub.f32 %v581_v17, %v2517_v11 }
 0x1f3   :  { %v628_v27 = vmul.f32 5.0, %v612_v31  ;;  %v613_v59 = vand.u32 2147483647, %v597_v7 }
 0x1f4   :  { %v327_v34 = vpop.f32.mrb[4].mxu1 }
 0x1f5   :  { %v644_v12 = vadd.f32 1.0, %v628_v27  ;;  %v629_v40 = vmul.f32 5.0, %v613_v59  ;;  %v582_v6 = vmul.f32 0.0010405828, %v327_v34  ;;  %v1453_v48 = vpop.f32.mrb[5].mxu1  ;;  %v2248_v59 = vld [vmem:[#allocation5 + $0x20] sm:$0xff] }
 0x1f6   :  { %v330_v13 = vpop.f32.mrb[6].mxu1  ;;  %v1602_v48 = vld [vmem:[#allocation5 + $0x10] sm:$0xff] }
 0x1f7   :  { %v916_v22 = vmul.f32 %v2518_v29, %v644_v12  ;;  %v932_v25 = vmul.f32 %v644_v12, %v2516_v26  ;;  %v645_v51 = vadd.f32 1.0, %v629_v40  ;;  %v598_v14 = vsub.f32 %v582_v6, %v2519_v30  ;;  %v1454_v57 = vpop.f32.mrb[7].mxu1  ;;  %v2522_v40 = vld [vmem:[#allocation24_spill] sm:$0xff]  ;;  %v2257_v30 = vld [vmem:[#allocation5 + $0x28] sm:$0xff] }
 0x1f8   :  { %v583_v46 = vmul.f32 0.0010405828, %v330_v13 }
 0x1f9   :  { %v1046_v41 = vmul.f32 %v916_v22, %v2516_v26  ;;  %v917_v39 = vmul.f32 %v2520_v32, %v645_v51  ;;  %v1153_v16 = vsel %vm114_vm0, %v916_v22, 0.0  ;;  %v933_v5 = vmul.f32 %v645_v51, %v2517_v11 }
 0x1fa   :  { %v614_v36 = vand.u32 2147483647, %v598_v14  ;;  %v599_v0 = vsub.f32 %v583_v46, %v2521_v3  ;;  %v1244_v20 = vsel %vm114_vm0, %v932_v25, 0.0 }
 0x1fb   :  { %v1062_v9 = vsel %vm114_vm0, %v1046_v41, 0.0  ;;  %v1047_v4 = vmul.f32 %v917_v39, %v2517_v11  ;;  %v1154_v23 = vsel %vm114_vm0, %v917_v39, 0.0  ;;  %v1245_v33 = vsel %vm114_vm0, %v933_v5, 0.0  ;;  %v2523_v39 = vld [vmem:[#allocation25_spill] sm:$0xff]  ;;  %v1604_v5 = vld [vmem:[#allocation5 + $0x18] sm:$0xff] }
 0x1fc   :  { %v1155_v58 = vadd.f32 %v1154_v23, %v1153_v16  ;;  %v630_v26 = vmul.f32 5.0, %v614_v36  ;;  %v615_v43 = vand.u32 2147483647, %v599_v0  ;;  %v368_v17 = vpop.f32.mrb[8].mxu1  ;;  %v450_v61 = vpop.f32.mrb[16].mxu0  ;;  %v1246_v49 = vadd.f32 %v1245_v33, %v1244_v20 }
 0x1fd   :  { %v1063_v50 = vsel %vm114_vm0, %v1047_v4, 0.0  ;;  %v584_v45 = vmul.f32 0.0010405828, %v368_v17  ;;  %v1459_v60 = vpop.f32.mrb[9].mxu1  ;;  %v2246_v31 = vmul.f32 0.0010405828, %v450_v61 }
 0x1fe   :  { %v1064_v7 = vadd.f32 %v1063_v50, %v1062_v9  ;;  %v1156_v38 = vrot.slane %v1155_v58, 4  ;;  %v646_v18 = vadd.f32 1.0, %v630_v26  ;;  %v631_v11 = vmul.f32 5.0, %v615_v43  ;;  %v371_v42 = vpop.f32.mrb[10].mxu1  ;;  %v1471_v63 = vpop.f32.mrb[17].mxu0 }
 0x1ff   :  { %v1247_v27 = vrot.slane %v1246_v49, 4  ;;  %v600_v24 = vsub.f32 %v584_v45, %v2248_v59  ;;  %v585_v34 = vmul.f32 0.0010405828, %v371_v42  ;;  %v1460_v19 = vpop.f32.mrb[11].mxu1  ;;  %v2251_v8 = vpop.f32.mrb[18].mxu0 }
 0x200   :  { %v1065_v62 = vrot.slane %v1064_v7, 4  ;;  %v1157_v12 = vadd.f32 %v1156_v38, %v1155_v58  ;;  %v918_v6 = vmul.f32 %v2522_v40, %v646_v18  ;;  %v934_v13 = vmul.f32 %v1602_v48, %v646_v18  ;;  %v1472_v29 = vpop.f32.mrb[19].mxu0 }
 0x201   :  { %v1248_v22 = vadd.f32 %v1247_v27, %v1246_v49  ;;  %v647_v25 = vadd.f32 1.0, %v631_v11  ;;  %v616_v51 = vand.u32 2147483647, %v600_v24  ;;  %v601_v14 = vsub.f32 %v585_v34, %v2257_v30  ;;  %v2279_v29 = vld [vmem:[#allocation5 + $0x40] sm:$0xff] }
 0x202   :  { %v1066_v57 = vadd.f32 %v1065_v62, %v1064_v7  ;;  %v1158_v46 = vrot.slane %v1157_v12, 2  ;;  %v1048_v41 = vmul.f32 %v1602_v48, %v918_v6  ;;  %v1162_v56 = vsel %vm114_vm0, %v918_v6, 0.0  ;;  %v2524_v48 = vld [vmem:[#allocation26_spill] sm:$0xff] }
 0x203   :  { %v1249_v1 = vrot.slane %v1248_v22, 2  ;;  %v1253_v32 = vsel %vm114_vm0, %v934_v13, 0.0  ;;  %v919_v16 = vmul.f32 %v2523_v39, %v647_v25  ;;  %v935_v36 = vmul.f32 %v1604_v5, %v647_v25 }
 0x204   :  { %v1067_v3 = vrot.slane %v1066_v57, 2  ;;  %v1159_v0 = vadd.f32 %v1158_v46, %v1157_v12  ;;  %v1071_v9 = vsel %vm114_vm0, %v1048_v41, 0.0  ;;  %v632_v20 = vmul.f32 5.0, %v616_v51  ;;  %v409_v4 = vpop.f32.mrb[12].mxu1  ;;  %v2264_v23 = vpop.f32.mrb[20].mxu0 }
 0x205   :  { %v1250_v58 = vadd.f32 %v1249_v1, %v1248_v22  ;;  %v1049_v33 = vmul.f32 %v1604_v5, %v919_v16  ;;  %v1163_v26 = vsel %vm114_vm0, %v919_v16, 0.0  ;;  %v1254_v43 = vsel %vm114_vm0, %v935_v36, 0.0  ;;  %v1465_v17 = vpop.f32.mrb[13].mxu1  ;;  %v1483_v61 = vpop.f32.mrb[21].mxu0 }
 0x206   :  { %v1068_v50 = vadd.f32 %v1067_v3, %v1066_v57  ;;  %v1160_v49 = vrot.slane %v1159_v0, 1  ;;  %v1164_v45 = vadd.f32 %v1163_v26, %v1162_v56  ;;  %v1255_v60 = vadd.f32 %v1254_v43, %v1253_v32  ;;  %v412_v7 = vpop.f32.mrb[14].mxu1  ;;  %v2268_v38 = vpop.f32.mrb[22].mxu0 }
 0x207   :  { %v1251_v18 = vrot.slane %v1250_v58, 1  ;;  %v1072_v11 = vsel %vm114_vm0, %v1049_v33, 0.0  ;;  %v648_v42 = vadd.f32 1.0, %v632_v20  ;;  %v617_v63 = vand.u32 2147483647, %v601_v14  ;;  %v1466_v27 = vpop.f32.mrb[15].mxu1 }
 0x208   :  { %v1069_v24 = vrot.slane %v1068_v50, 1  ;;  %v1073_v34 = vadd.f32 %v1072_v11, %v1071_v9  ;;  %v1165_v19 = vrot.slane %v1164_v45, 4  ;;  %v1484_v62 = vpop.f32.mrb[23].mxu0  ;;  %v2274_v12 = vadd.f32 %v1018_v55, %v2213_v15  ;;  %v2525_v20 = vld [vmem:[#allocation27_spill] sm:$0xff] }
 0x209   :  { %v2276_v40 = vadd.f32 %v1160_v49, %v1159_v0  ;;  %v1256_v6 = vrot.slane %v1255_v60, 4  ;;  %v920_v13 = vmul.f32 %v2524_v48, %v648_v42  ;;  %v604_v22 = vsub.f32 %v2246_v31, %v2279_v29 }
 0x20a   :  { %v2283_v25 = vadd.f32 %v1251_v18, %v1250_v58  ;;  %v1074_v51 = vrot.slane %v1073_v34, 4  ;;  %v1166_v14 = vadd.f32 %v1165_v19, %v1164_v45  ;;  %v633_v57 = vmul.f32 5.0, %v617_v63 }
 0x20b   :  { %v2285_v46 = vadd.f32 %v1069_v24, %v1068_v50  ;;  %v1257_v41 = vadd.f32 %v1256_v6, %v1255_v60  ;;  %v936_v15 = vmul.f32 %v2248_v59, %v648_v42  ;;  %v1050_v55 = vmul.f32 %v2248_v59, %v920_v13  ;;  %v1606_v59 = vld [vmem:[#allocation5 + $0x30] sm:$0xff]  ;;  %v2294_v50 = vld [vmem:[#allocation5 + $0x38] sm:$0xff] }
 0x20c   :  { %v1075_v56 = vadd.f32 %v1074_v51, %v1073_v34  ;;  %v1167_v1 = vrot.slane %v1166_v14, 2  ;;  %v649_v32 = vadd.f32 1.0, %v633_v57  ;;  %v586_v39 = vmul.f32 0.0010405828, %v409_v4  ;;  %v2289_v16 = vpop.f32.mrb[16].mxu1 }
 0x20d   :  { %v1258_v5 = vrot.slane %v1257_v41, 2  ;;  %v1171_v31 = vsel %vm114_vm0, %v920_v13, 0.0  ;;  %v620_v36 = vand.u32 2147483647, %v604_v22  ;;  %v587_v3 = vmul.f32 0.0010405828, %v412_v7 }
 0x20e   :  { %v1076_v0 = vrot.slane %v1075_v56, 2  ;;  %v1168_v9 = vadd.f32 %v1167_v1, %v1166_v14  ;;  %v921_v58 = vmul.f32 %v2525_v20, %v649_v32  ;;  %v937_v33 = vmul.f32 %v2257_v30, %v649_v32  ;;  %v1477_v26 = vpop.f32.mrb[17].mxu1 }
 0x20f   :  { %v1259_v43 = vadd.f32 %v1258_v5, %v1257_v41  ;;  %v602_v17 = vsub.f32 %v586_v39, %v1606_v59  ;;  %v636_v61 = vmul.f32 5.0, %v620_v36  ;;  %v603_v4 = vsub.f32 %v587_v3, %v2294_v50  ;;  %v2297_v49 = vpop.f32.mrb[18].mxu1 }
 0x210   :  { %v1077_v45 = vadd.f32 %v1076_v0, %v1075_v56  ;;  %v1169_v60 = vrot.slane %v1168_v9, 1  ;;  %v1051_v7 = vmul.f32 %v2257_v30, %v921_v58  ;;  %v1172_v18 = vsel %vm114_vm0, %v921_v58, 0.0  ;;  %v1478_v11 = vpop.f32.mrb[19].mxu1  ;;  %v2526_v58 = vld [vmem:[#allocation28_spill] sm:$0xff] }
 0x211   :  { %v1262_v42 = vsel %vm114_vm0, %v936_v15, 0.0  ;;  %v1173_v63 = vadd.f32 %v1172_v18, %v1171_v31  ;;  %v1263_v27 = vsel %vm114_vm0, %v937_v33, 0.0  ;;  %v618_v24 = vand.u32 2147483647, %v602_v17 }
 0x212   :  { %v1260_v34 = vrot.slane %v1259_v43, 1  ;;  %v1080_v19 = vsel %vm114_vm0, %v1050_v55, 0.0  ;;  %v1081_v62 = vsel %vm114_vm0, %v1051_v7, 0.0  ;;  %v1264_v6 = vadd.f32 %v1263_v27, %v1262_v42 }
 0x213   :  { %v1078_v48 = vrot.slane %v1077_v45, 1  ;;  %v1082_v13 = vadd.f32 %v1081_v62, %v1080_v19  ;;  %v1174_v22 = vrot.slane %v1173_v63, 4  ;;  %v634_v51 = vmul.f32 5.0, %v618_v24 }
 0x214   :  { %v2305_v30 = vadd.f32 %v1169_v60, %v1168_v9  ;;  %v1265_v14 = vrot.slane %v1264_v6, 4  ;;  %v652_v57 = vadd.f32 1.0, %v636_v61  ;;  %v619_v41 = vand.u32 2147483647, %v603_v4  ;;  %v2307_v15 = vpop.f32.mrb[20].mxu1 }
 0x215   :  { %v1083_v56 = vrot.slane %v1082_v13, 4  ;;  %v1175_v1 = vadd.f32 %v1174_v22, %v1173_v63  ;;  %v650_v32 = vadd.f32 1.0, %v634_v51  ;;  %v589_v39 = vmul.f32 0.0010405828, %v2251_v8  ;;  %v1489_v55 = vpop.f32.mrb[21].mxu1 }
 0x216   :  { %v1266_v5 = vadd.f32 %v1265_v14, %v1264_v6  ;;  %v924_v31 = vmul.f32 %v2160_v53, %v652_v57  ;;  %v940_v36 = vmul.f32 %v2279_v29, %v652_v57  ;;  %v635_v3 = vmul.f32 5.0, %v619_v41  ;;  %v2312_v0 = vpop.f32.mrb[22].mxu1  ;;  %v1609_v55 = vld [vmem:[#allocation5 + $0x50] sm:$0xff] }
 0x217   :  { %v1084_v9 = vadd.f32 %v1083_v56, %v1082_v13  ;;  %v1176_v20 = vrot.slane %v1175_v1, 2  ;;  %v922_v33 = vmul.f32 %v2526_v58, %v650_v32  ;;  %v938_v26 = vmul.f32 %v1606_v59, %v650_v32  ;;  %v1490_v17 = vpop.f32.mrb[23].mxu1 }
 0x218   :  { %v2315_v61 = vadd.f32 %v1078_v48, %v1077_v45  ;;  %v2317_v4 = vadd.f32 %v1260_v34, %v1259_v43  ;;  %v1267_v8 = vrot.slane %v1266_v5, 2  ;;  %v1054_v60 = vmul.f32 %v2279_v29, %v924_v31  ;;  %v1608_v34 = vld [vmem:[#allocation5 + $0x48] sm:$0xff] }
 0x219   :  { %v1085_v7 = vrot.slane %v1084_v9, 2  ;;  %v1177_v53 = vadd.f32 %v1176_v20, %v1175_v1  ;;  %v1052_v18 = vmul.f32 %v1606_v59, %v922_v33  ;;  %v2321_v11 = vsel %vm114_vm0, %v924_v31, 0.0 }
 0x21a   :  { %v1268_v42 = vadd.f32 %v1267_v8, %v1266_v5  ;;  %v1180_v63 = vsel %vm114_vm0, %v922_v33, 0.0  ;;  %v1280_v27 = vsel %vm114_vm0, %v940_v36, 0.0  ;;  %v651_v24 = vadd.f32 1.0, %v635_v3  ;;  %v1610_v36 = vld [vmem:[#allocation5 + $0x60] sm:$0xff] }
 0x21b   :  { %v2325_v19 = vadd.f32 %v1085_v7, %v1084_v9  ;;  %v1271_v43 = vsel %vm114_vm0, %v938_v26, 0.0  ;;  %v1098_v45 = vsel %vm114_vm0, %v1054_v60, 0.0  ;;  %v605_v29 = vsub.f32 %v589_v39, %v1608_v34 }
 0x21c   :  { %v1178_v62 = vrot.slane %v1177_v53, 1  ;;  %v923_v59 = vmul.f32 %v2166_v54, %v651_v24  ;;  %v939_v6 = vmul.f32 %v2294_v50, %v651_v24  ;;  %v590_v48 = vmul.f32 0.0010405828, %v2289_v16 }
 0x21d   :  { %v1269_v13 = vrot.slane %v1268_v42, 1  ;;  %v1089_v22 = vsel %vm114_vm0, %v1052_v18, 0.0  ;;  %v621_v51 = vand.u32 2147483647, %v605_v29  ;;  %v592_v14 = vmul.f32 0.0010405828, %v2264_v23 }
 0x21e   :  { %v1087_v57 = vrot.slane %v2325_v19, 1  ;;  %v1053_v41 = vmul.f32 %v2294_v50, %v923_v59  ;;  %v1181_v56 = vsel %vm114_vm0, %v923_v59, 0.0  ;;  %v1272_v1 = vsel %vm114_vm0, %v939_v6, 0.0  ;;  %v1611_v29 = vld [vmem:[#allocation5 + $0x58] sm:$0xff] }
 0x21f   :  { %v1182_v32 = vadd.f32 %v1181_v56, %v1180_v63  ;;  %v1273_v54 = vadd.f32 %v1272_v1, %v1271_v43  ;;  %v637_v39 = vmul.f32 5.0, %v621_v51  ;;  %v606_v5 = vsub.f32 %v590_v48, %v1609_v55 }
 0x220   :  { %v2338_v16 = vadd.f32 %v1178_v62, %v1177_v53  ;;  %v1090_v31 = vsel %vm114_vm0, %v1053_v41, 0.0  ;;  %v608_v3 = vsub.f32 %v592_v14, %v1610_v36  ;;  %v591_v23 = vmul.f32 0.0010405828, %v2297_v49 }
 0x221   :  { %v1091_v9 = vadd.f32 %v1090_v31, %v1089_v22  ;;  %v1183_v20 = vrot.slane %v1182_v32, 4  ;;  %v1274_v50 = vrot.slane %v1273_v54, 4  ;;  %v653_v58 = vadd.f32 1.0, %v637_v39 }
 0x222   :  { %v2342_v33 = vadd.f32 %v1269_v13, %v1268_v42  ;;  %v622_v26 = vand.u32 2147483647, %v606_v5  ;;  %v624_v17 = vand.u32 2147483647, %v608_v3  ;;  %v593_v8 = vmul.f32 0.0010405828, %v2268_v38 }
 0x223   :  { %v1092_v60 = vrot.slane %v1091_v9, 4  ;;  %v1184_v7 = vadd.f32 %v1183_v20, %v1182_v32  ;;  %v1275_v53 = vadd.f32 %v1274_v50, %v1273_v54  ;;  %v925_v18 = vmul.f32 %v2175_v21, %v653_v58  ;;  %v2348_v38 = vld [vmem:[#allocation5 + $0x68] sm:$0xff] }
 0x224   :  { %v941_v63 = vmul.f32 %v1608_v34, %v653_v58  ;;  %v638_v24 = vmul.f32 5.0, %v622_v26  ;;  %v640_v43 = vmul.f32 5.0, %v624_v17  ;;  %v607_v49 = vsub.f32 %v591_v23, %v1611_v29 }
 0x225   :  { %v1093_v62 = vadd.f32 %v1092_v60, %v1091_v9  ;;  %v1185_v59 = vrot.slane %v1184_v7, 2  ;;  %v1276_v6 = vrot.slane %v1275_v53, 2  ;;  %v1055_v48 = vmul.f32 %v1608_v34, %v925_v18 }
 0x226   :  { %v1190_v42 = vsel %vm114_vm0, %v925_v18, 0.0  ;;  %v1281_v13 = vsel %vm114_vm0, %v941_v63, 0.0  ;;  %v654_v22 = vadd.f32 1.0, %v638_v24  ;;  %v609_v51 = vsub.f32 %v593_v8, %v2348_v38 }
 0x227   :  { %v1094_v14 = vrot.slane %v1093_v62, 2  ;;  %v1186_v21 = vadd.f32 %v1185_v59, %v1184_v7  ;;  %v1099_v41 = vsel %vm114_vm0, %v1055_v48, 0.0  ;;  %v656_v56 = vadd.f32 1.0, %v640_v43 }
 0x228   :  { %v1100_v1 = vadd.f32 %v1099_v41, %v1098_v45  ;;  %v1191_v32 = vadd.f32 %v1190_v42, %v2321_v11  ;;  %v1282_v54 = vadd.f32 %v1281_v13, %v1280_v27  ;;  %v926_v34 = vmul.f32 %v2189_v47, %v654_v22 }
 0x229   :  { %v2354_v39 = vadd.f32 %v1094_v14, %v1093_v62  ;;  %v2356_v5 = vadd.f32 %v1276_v6, %v1275_v53  ;;  %v942_v31 = vmul.f32 %v1609_v55, %v654_v22  ;;  %v623_v3 = vand.u32 2147483647, %v607_v49  ;;  %v1613_v14 = vld [vmem:[#allocation5 + $0x70] sm:$0xff] }
 0x22a   :  { %v1101_v23 = vrot.slane %v1100_v1, 4  ;;  %v1192_v9 = vrot.slane %v1191_v32, 4  ;;  %v1283_v20 = vrot.slane %v1282_v54, 4  ;;  %v1056_v50 = vmul.f32 %v1609_v55, %v926_v34 }
 0x22b   :  { %v1187_v58 = vrot.slane %v1186_v21, 1  ;;  %v1198_v26 = vsel %vm114_vm0, %v926_v34, 0.0  ;;  %v928_v45 = vmul.f32 %v2194_v52, %v656_v56  ;;  %v944_v17 = vmul.f32 %v1610_v36, %v656_v56  ;;  %v1614_v56 = vld [vmem:[#allocation5 + $0x78] sm:$0xff] }
 0x22c   :  { %v2360_v11 = vadd.f32 %v1101_v23, %v1100_v1  ;;  %v1193_v27 = vadd.f32 %v1192_v9, %v1191_v32  ;;  %v2362_v47 = vadd.f32 %v1283_v20, %v1282_v54  ;;  %v1289_v8 = vsel %vm114_vm0, %v942_v31, 0.0 }
 0x22d   :  { %v1107_v60 = vsel %vm114_vm0, %v1056_v50, 0.0  ;;  %v1058_v7 = vmul.f32 %v1610_v36, %v928_v45  ;;  %v1207_v53 = vsel %vm114_vm0, %v928_v45, 0.0  ;;  %v639_v18 = vmul.f32 5.0, %v623_v3 }
 0x22e   :  { %v1103_v55 = vrot.slane %v2360_v11, 2  ;;  %v1194_v63 = vrot.slane %v1193_v27, 2  ;;  %v1298_v24 = vsel %vm114_vm0, %v944_v17, 0.0  ;;  %v625_v52 = vand.u32 2147483647, %v609_v51 }
 0x22f   :  { %v1285_v43 = vrot.slane %v2362_v47, 2  ;;  %v655_v49 = vadd.f32 1.0, %v639_v18  ;;  %v594_v62 = vmul.f32 0.0010405828, %v2307_v15  ;;  %v595_v59 = vmul.f32 0.0010405828, %v2312_v0 }
 0x230   :  { %v1195_v6 = vadd.f32 %v1194_v63, %v1193_v27  ;;  %v1116_v48 = vsel %vm114_vm0, %v1058_v7, 0.0  ;;  %v641_v36 = vmul.f32 5.0, %v625_v52  ;;  %v1188_v42 = vadd.f32 %v1187_v58, %v1186_v21 }
 0x231   :  { %v927_v13 = vmul.f32 %v2202_v2, %v655_v49  ;;  %v943_v22 = vmul.f32 %v1611_v29, %v655_v49  ;;  %v610_v41 = vsub.f32 %v594_v62, %v1613_v14  ;;  %v611_v1 = vsub.f32 %v595_v59, %v1614_v56 }
 0x232   :  { %v657_v51 = vadd.f32 1.0, %v641_v36  ;;  %v1196_v32 = vrot.slane %v1195_v6, 1  ;;  %v1233_v15 = vsel %vm1028_vm15, %v2305_v30, %v2276_v40  ;;  %v2380_v0 = vadd.f32 %v1087_v57, %v2325_v19 }
 0x233   :  { %v1057_v54 = vmul.f32 %v1611_v29, %v927_v13  ;;  %v1199_v21 = vsel %vm114_vm0, %v927_v13, 0.0  ;;  %v1290_v2 = vsel %vm114_vm0, %v943_v22, 0.0  ;;  %v626_v34 = vand.u32 2147483647, %v610_v41 }
 0x234   :  { %v1200_v31 = vadd.f32 %v1199_v21, %v1198_v26  ;;  %v1291_v3 = vadd.f32 %v1290_v2, %v1289_v8  ;;  %v929_v23 = vmul.f32 %v2218_v10, %v657_v51  ;;  %v945_v9 = vmul.f32 %v2348_v38, %v657_v51 }
 0x235   :  { %v1108_v20 = vsel %vm114_vm0, %v1057_v54, 0.0  ;;  %v642_v40 = vmul.f32 5.0, %v626_v34  ;;  %v627_v30 = vand.u32 2147483647, %v611_v1  ;;  %v1197_v50 = vadd.f32 %v1196_v32, %v1195_v6 }
 0x236   :  { %v1109_v58 = vadd.f32 %v1108_v20, %v1107_v60  ;;  %v1201_v19 = vrot.slane %v1200_v31, 4  ;;  %v1292_v57 = vrot.slane %v1291_v3, 4  ;;  %v1059_v29 = vmul.f32 %v2348_v38, %v929_v23 }
 0x237   :  { %v1208_v45 = vsel %vm114_vm0, %v929_v23, 0.0  ;;  %v1299_v17 = vsel %vm114_vm0, %v945_v9, 0.0  ;;  %v658_v26 = vadd.f32 1.0, %v642_v40  ;;  %v643_v27 = vmul.f32 5.0, %v627_v30 }
 0x238   :  { %v1110_v8 = vrot.slane %v1109_v58, 4  ;;  %v1202_v10 = vadd.f32 %v1201_v19, %v1200_v31  ;;  %v2390_v7 = vadd.f32 %v1292_v57, %v1291_v3  ;;  %v1117_v18 = vsel %vm114_vm0, %v1059_v29, 0.0 }
 0x239   :  { %v1118_v63 = vadd.f32 %v1117_v18, %v1116_v48  ;;  %v1209_v52 = vadd.f32 %v1208_v45, %v1207_v53  ;;  %v1300_v49 = vadd.f32 %v1299_v17, %v1298_v24  ;;  %v930_v60 = vmul.f32 %v2222_v28, %v658_v26 }
 0x23a   :  { %v1111_v62 = vadd.f32 %v1110_v8, %v1109_v58  ;;  %v1203_v59 = vrot.slane %v1202_v10, 2  ;;  %v1294_v38 = vrot.slane %v2390_v7, 2  ;;  %v946_v6 = vmul.f32 %v1613_v14, %v658_v26 }
 0x23b   :  { %v1119_v36 = vrot.slane %v1118_v63, 4  ;;  %v1210_v13 = vrot.slane %v1209_v52, 4  ;;  %v1301_v22 = vrot.slane %v1300_v49, 4  ;;  %v1060_v41 = vmul.f32 %v1613_v14, %v930_v60 }
 0x23c   :  { %v1216_v1 = vsel %vm114_vm0, %v930_v60, 0.0  ;;  %v1307_v51 = vsel %vm114_vm0, %v946_v6, 0.0  ;;  %v659_v32 = vadd.f32 1.0, %v643_v27  ;;  %v1204_v48 = vadd.f32 %v1203_v59, %v1202_v10 }
 0x23d   :  { %v1211_v53 = vadd.f32 %v1210_v13, %v1209_v52  ;;  %v1302_v24 = vadd.f32 %v1301_v22, %v1300_v49  ;;  %v1125_v28 = vsel %vm114_vm0, %v1060_v41, 0.0  ;;  %v1234_v54 = vsel %vm1030_vm2, %v2338_v16, %v1233_v15 }
 0x23e   :  { %v931_v21 = vmul.f32 %v2229_v44, %v659_v32  ;;  %v947_v2 = vmul.f32 %v1614_v56, %v659_v32  ;;  %v1205_v34 = vrot.slane %v1204_v48, 1  ;;  %v1235_v14 = vsel %vm1032_vm5, %v1188_v42, %v1234_v54 }
 0x23f   :  { %v1212_v31 = vrot.slane %v1211_v53, 2  ;;  %v1236_v3 = vsel %vm1034_vm6, %v1197_v50, %v1235_v14  ;;  %v1096_v23 = vrot.slane %v2354_v39, 1  ;;  %v1104_v9 = vadd.f32 %v1103_v55, %v2360_v11 }
 0x240   :  { %v1061_v20 = vmul.f32 %v1614_v56, %v931_v21  ;;  %v1217_v40 = vsel %vm114_vm0, %v931_v21, 0.0  ;;  %v1308_v16 = vsel %vm114_vm0, %v947_v2, 0.0  ;;  %v1206_v15 = vadd.f32 %v1205_v34, %v1204_v48 }
 0x241   :  { %v1218_v44 = vadd.f32 %v1217_v40, %v1216_v1  ;;  %v1309_v30 = vadd.f32 %v1308_v16, %v1307_v51  ;;  %v1213_v58 = vadd.f32 %v1212_v31, %v1211_v53  ;;  %v1097_v42 = vadd.f32 %v1096_v23, %v2354_v39 }
 0x242   :  { %v1126_v19 = vsel %vm114_vm0, %v1061_v20, 0.0  ;;  %v1237_v50 = vsel %vm1036_vm7, %v1206_v15, %v1236_v3  ;;  %v1105_v57 = vrot.slane %v1104_v9, 1  ;;  %v1112_v29 = vrot.slane %v1111_v62, 2 }
 0x243   :  { %v1127_v45 = vadd.f32 %v1126_v19, %v1125_v28  ;;  %v1219_v17 = vrot.slane %v1218_v44, 4  ;;  %v1310_v11 = vrot.slane %v1309_v30, 4  ;;  %v1214_v55 = vrot.slane %v1213_v58, 1 }
 0x244   :  { %v1106_v56 = vadd.f32 %v1105_v57, %v1104_v9  ;;  %v1113_v26 = vadd.f32 %v1112_v29, %v1111_v62  ;;  %v1120_v27 = vadd.f32 %v1119_v36, %v1118_v63  ;;  %v1142_v8 = vsel %vm1028_vm15, %v2315_v61, %v2285_v46 }
 0x245   :  { %v1215_v10 = vadd.f32 %v1214_v55, %v1213_v58  ;;  %v1220_v39 = vadd.f32 %v1219_v17, %v1218_v44  ;;  %v1128_v18 = vrot.slane %v1127_v45, 4  ;;  %v1143_v52 = vsel %vm1030_vm2, %v2380_v0, %v1142_v8 }
 0x246   :  { %v1286_v49 = vadd.f32 %v1285_v43, %v2362_v47  ;;  %v1114_v60 = vrot.slane %v1113_v26, 1  ;;  %v1121_v59 = vrot.slane %v1120_v27, 2  ;;  %v1144_v6 = vsel %vm1032_vm5, %v1097_v42, %v1143_v52 }
 0x247   :  { %v1221_v62 = vrot.slane %v1220_v39, 2  ;;  %v1238_v63 = vsel %vm1038_vm8, %v1215_v10, %v1237_v50  ;;  %v1129_v36 = vadd.f32 %v1128_v18, %v1127_v45  ;;  %v1145_v46 = vsel %vm1034_vm6, %v1106_v56, %v1144_v6 }
 0x248   :  { %v1278_v61 = vrot.slane %v2356_v5, 1  ;;  %v1115_v13 = vadd.f32 %v1114_v60, %v1113_v26  ;;  %v1122_v22 = vadd.f32 %v1121_v59, %v1120_v27  ;;  %v1295_v0 = vadd.f32 %v1294_v38, %v2390_v7 }
 0x249   :  { %v1222_v41 = vadd.f32 %v1221_v62, %v1220_v39  ;;  %v1130_v1 = vrot.slane %v1129_v36, 2  ;;  %v1303_v51 = vrot.slane %v1302_v24, 2  ;;  %v1311_v47 = vadd.f32 %v1310_v11, %v1309_v30 }
 0x24a   :  { %v1123_v43 = vrot.slane %v1122_v22, 1  ;;  %v1146_v32 = vsel %vm1036_vm7, %v1115_v13, %v1145_v46  ;;  %v1287_v48 = vrot.slane %v1286_v49, 1  ;;  %v1296_v53 = vrot.slane %v1295_v0, 1 }
 0x24b   :  { %v1223_v28 = vrot.slane %v1222_v41, 1  ;;  %v1131_v54 = vadd.f32 %v1130_v1, %v1129_v36  ;;  %v1304_v21 = vadd.f32 %v1303_v51, %v1302_v24  ;;  %v1312_v2 = vrot.slane %v1311_v47, 2 }
 0x24c   :  { %v1124_v34 = vadd.f32 %v1123_v43, %v1122_v22  ;;  %v1279_v14 = vadd.f32 %v1278_v61, %v2356_v5  ;;  %v1324_v7 = vsel %vm1028_vm15, %v2317_v4, %v2283_v25  ;;  %v1039_v38 = vsel %vm1038_vm8, %v2234_v35, %v2254_v37 }
 0x24d   :  { %v1224_v31 = vadd.f32 %v1223_v28, %v1222_v41  ;;  %v1132_v3 = vrot.slane %v1131_v54, 1  ;;  %v1305_v23 = vrot.slane %v1304_v21, 1  ;;  %v1313_v9 = vadd.f32 %v1312_v2, %v1311_v47 }
 0x24e   :  { %v1147_v20 = vsel %vm1038_vm8, %v1124_v34, %v1146_v32  ;;  %v1297_v40 = vadd.f32 %v1296_v53, %v1295_v0  ;;  %v1325_v24 = vsel %vm1030_vm2, %v2342_v33, %v1324_v7  ;;  %v1288_v15 = vadd.f32 %v1287_v48, %v1286_v49 }
 0x24f   :  { %v1239_v5 = vsel %vm1040_vm9, %v1224_v31, %v1238_v63  ;;  %v1133_v16 = vadd.f32 %v1132_v3, %v1131_v54  ;;  %v1314_v44 = vrot.slane %v1313_v9, 1  ;;  %v1326_v4 = vsel %vm1032_vm5, %v1279_v14, %v1325_v24 }
 0x250   :  { %v1241_v25 = vsel %vm114_vm0, %v1239_v5, 0.0  ;;  %v1041_v35 = vsel %vm1040_vm9, %v2274_v12, %v1039_v38  ;;  %v1306_v30 = vadd.f32 %v1305_v23, %v1304_v21  ;;  %v1327_v42 = vsel %vm1034_vm6, %v1288_v15, %v1326_v4 }
 0x251   :  { %1242 = vadd.xlane.f32.xlu0 %v1241_v25  ;;  %v1148_v37 = vsel %vm1040_vm9, %v1133_v16, %v1147_v20  ;;  %v1315_v58 = vadd.f32 %v1314_v44, %v1313_v9  ;;  %v1328_v19 = vsel %vm1036_vm7, %v1297_v40, %v1327_v42  ;;  %v1043_v29 = vsel %vm114_vm0, %v1041_v35, 0.0 }
 0x252   :  { %v1150_v33 = vsel %vm114_vm0, %v1148_v37, 0.0  ;;  %v1329_v50 = vsel %vm1038_vm8, %v1306_v30, %v1328_v19 }
 0x253   :  { %1151 = vadd.xlane.f32.xlu1 %v1150_v33  ;;  %v1330_v57 = vsel %vm1040_vm9, %v1315_v58, %v1329_v50 }
 0x254   :  { %v1332_v12 = vsel %vm114_vm0, %v1330_v57, 0.0 }
 0x255   :  { %1333 = vadd.xlane.f32.xlu0 %v1332_v12 }
 0x257   :  { %1044 = vadd.xlane.f32.xlu1 %v1043_v29 }
 0x2de   :  { %v1243_v45 = vpop.xlane.xlu0 %1242 }
 0x2e0   :  { %v1152_v17 = vpop.xlane.xlu1 %1151 }
 0x2e1   :  { %1337 = vst [vmem:[#allocation9] sm:$0xff] %v1152_v17 }
 0x2e2   :  { %1692 = shalt.err (!%p1689_p0)
}
 0x2e3   :  { %s1693_s20 = scalar_lea.hbm %s2490_s5, 128 }
 0x2e4   :  { %p1694_p1 = scmp.ne.s32.totalorder %s2490_s5, %s1693_s20  ;;  %p1697_p2 = scmp.lt.u32.totalorder %s1693_s20, %s2490_s5 }
 0x2e6   :  { %p1699_p3 = pnand %p1697_p2, %p1694_p1 }
 0x2e8   :  { %1702 = shalt.err (!%p1699_p3)
}
 0x2e9   :  { %1358 = dma.vmem_to_hbm [thread:$0]  %s1356_s3, 128, %s2490_s5, [#allocation10]   ;;  %v1334_v11 = vpop.xlane.xlu0 %1333  ;;  %v1045_v56 = vpop.xlane.xlu1 %1044 }
 0x2ea   :  { %v1335_v55 = vadd.f32 %v1334_v11, %v1243_v45  ;;  %1336 = vst [vmem:[#allocation8] sm:$0xff] %v1045_v56  ;;  %s1703_s27 = scalar_lea.vmem %s1346_s14, 128  ;;  %p1708_p5 = scmp.lt.s32.totalorder %s1346_s14, %s1346_s14 }
 0x2eb   :  { %p1704_p4 = scmp.ne.s32.totalorder %s1346_s14, %s1703_s27  ;;  %p1709_p6 = scmp.lt.s32.totalorder %s1703_s27, %s1703_s27 }
 0x2ec   :  { %1338 = vst [vmem:[#allocation11] sm:$0xff] %v1335_v55 }
 0x2ed   :  { %p1710_p7 = por %p1709_p6, %p1708_p5 }
 0x2ef   :  { %p1711_p8 = pnand %p1710_p7, %p1704_p4 }
 0x2f1   :  { %1714 = shalt.err (!%p1711_p8)
}
 0x2f2   :  { %s1715_s30 = scalar_lea.hbm %s2489_s4, 128 }
 0x2f3   :  { %p1716_p9 = scmp.ne.s32.totalorder %s2489_s4, %s1715_s30  ;;  %p1719_p10 = scmp.lt.u32.totalorder %s1715_s30, %s2489_s4 }
 0x2f5   :  { %p1721_p11 = pnand %p1719_p10, %p1716_p9 }
 0x2f7   :  { %1724 = shalt.err (!%p1721_p11)
}
 0x2f8   :  { %1348 = dma.vmem_to_hbm [thread:$0]  %s1346_s14, 128, %s2489_s4, [#allocation4]  }
 0x2f9   :  { %s1725_s10 = scalar_lea.vmem %s1366_s16, 128  ;;  %p1730_p13 = scmp.lt.s32.totalorder %s1366_s16, %s1366_s16 }
 0x2fa   :  { %p1726_p12 = scmp.ne.s32.totalorder %s1366_s16, %s1725_s10  ;;  %p1731_p0 = scmp.lt.s32.totalorder %s1725_s10, %s1725_s10 }
 0x2fc   :  { %p1732_p1 = por %p1731_p0, %p1730_p13 }
 0x2fe   :  { %p1733_p2 = pnand %p1732_p1, %p1726_p12 }
 0x300   :  { %1736 = shalt.err (!%p1733_p2)
}
 0x301   :  { %s1737_s2 = scalar_lea.hbm %s2491_s6, 128 }
 0x302   :  { %p1738_p3 = scmp.ne.s32.totalorder %s2491_s6, %s1737_s2  ;;  %p1741_p4 = scmp.lt.u32.totalorder %s1737_s2, %s2491_s6 }
 0x304   :  { %p1743_p5 = pnand %p1741_p4, %p1738_p3 }
 0x306   :  { %1746 = shalt.err (!%p1743_p5)
}
 0x307   :  { %1368 = dma.vmem_to_hbm [thread:$0]  %s1366_s16, 128, %s2491_s6, [#allocation10]  }
 0x308   :  { %1751 = dma.done.wait [#allocation4], 128  }
 0x309   :  { %1752 = vsyncadd [#allocation4], 4294967168 }
 0x30a   :  { %1753 = dma.done.wait [#allocation10], 256  }
 0x30b   :  { %1754 = vsyncadd [#allocation10], 4294967040 }
 0x30c   :  { %1378 = vsyncpa [#allocation3], 1 }
 0x30d   :  { %1379 = vsyncpa [#allocation6], 1 }
 0x30e   :  { %1380 = vsyncpa [#allocation4], 1 }
 0x30f   :  { %1381 = vsyncpa [#allocation10], 1 }

</bundles_post_ra>
